<compile_context>
chip_gen: v5e
topology: v5e:2x2
jax: 0.10.0
libtpu: 0.0.40
codegen_flags: <defaults>
</compile_context>

<pallas_src>
import math

import jax
import jax.numpy as jnp
from jax.experimental import pallas as pl
from jax.experimental.pallas import tpu as pltpu


def _round_up(x, m):
    return ((x + m - 1) // m) * m


def _encoder_darnn_kernel(x_ref,       # (TB, T1*N)        driving series, batch-major, lane-flattened
                          w1xblk_ref,  # (T1*N, N*H)       block-structured attn layer-1 series weight
                          b1t_ref,     # (1, N*H)          attn layer-1 bias, tiled N times
                          w2blk_ref,   # (N*H, N)  bf16    block-diagonal attn layer-2 weight
                          ws_ref,      # (2H, 4H+N*H)      fused state weight [[Whh, tile(W1h)],[0, tile(W1c)]]
                          wih_ref,     # (N, 4H)           LSTM W_ih^T, gate order i, f, g, o
                          bl_ref,      # (1, 4H)           b_ih + b_hh
                          iw_ref,      # out (TB, T1*N)    input_weighted
                          ie_ref,      # out (TB, T1*H)    input_encoded
                          st_ref):     # scratch (TB, 2H)  packed LSTM state [h | c]
    N, G = wih_ref.shape           # G = 4H
    H = G // 4
    T1 = iw_ref.shape[1] // N

    # Time-invariant, lane-dense attention pre-activation (one MXU push per tile):
    #   xpart[b, n*H + j] = sum_t X[b, t, n] * W1x[t, j] + b1[j]
    x_all = x_ref[...]                                                     # (TB, T1*N) f32
    xpart = (jnp.dot(x_all, w1xblk_ref[...], preferred_element_type=jnp.float32)
             + b1t_ref[...])                                               # (TB, N*H)

    st_ref[...] = jnp.zeros_like(st_ref)                                   # [h | c] = 0

    # T1 is small and static -> full unroll; the recurrence is serial, batch tiles
    # give the parallelism.
    for t in range(T1):
        st = st_ref[...]                                                   # (TB, 2H) packed [h | c]
        c_prev = st[:, H:]

        # One fused MXU push for everything state-dependent:
        #   A[:, :4H] = h @ Whh^T                         (LSTM hidden gate term)
        #   A[:, 4H:] = tile_N(h @ W1h^T + c @ W1c^T)     (attn state term, lane-tiled)
        A = jnp.dot(st, ws_ref[...], preferred_element_type=jnp.float32)   # (TB, 4H + N*H)
        gates_h = A[:, :G]
        hc_tiled = A[:, G:]

        # Attention layer-1 + tanh, fully lane-dense over N*H lanes.
        z = jnp.tanh(xpart + hc_tiled)                                     # (TB, N*H)

        # Attention layer-2 as a block-diagonal matmul on the (otherwise idle) MXU.
        # b2 is constant over the softmax axis -> exact no-op (dropped).
        score = jnp.dot(z.astype(jnp.bfloat16), w2blk_ref[...],
                        preferred_element_type=jnp.float32)                # (TB, N)

        # Softmax over the N driving series.  Max-subtraction dropped: z = tanh(.)
        # lies in [-1, 1] so |score| <= ||w2||_1 << 88 and exp cannot overflow.
        e = jnp.exp(score)
        attn = e * pl.reciprocal(jnp.sum(e, axis=-1, keepdims=True), approx=True)

        xt = x_all[:, t * N:(t + 1) * N]                                   # (TB, N)
        wx = attn * xt                                                     # (TB, N)

        # Single LSTM cell step (PyTorch gate order i, f, g, o); recurrence kept f32.
        gates = (jnp.dot(wx, wih_ref[...], preferred_element_type=jnp.float32)
                 + gates_h + bl_ref[...])                                  # (TB, 4H)
        S = jax.nn.sigmoid(gates)                 # one full 128-lane EUP pass
        i_g = S[:, 0 * H:1 * H]
        f_g = S[:, 1 * H:2 * H]
        o_g = S[:, 3 * H:4 * H]
        g_g = jnp.tanh(gates[:, 2 * H:3 * H])
        c_new = f_g * c_prev + i_g * g_g
        h_new = o_g * jnp.tanh(c_new)

        st_ref[:, :H] = h_new
        st_ref[:, H:] = c_new
        iw_ref[:, t * N:(t + 1) * N] = wx
        ie_ref[:, t * H:(t + 1) * H] = h_new


def encoder_darnn_forward(X, params):
    """Pallas EncoderDARNN.forward.  X: (B, T-1, N) f32 -> (input_weighted, input_encoded)."""
    B, T1, N = X.shape
    H = params["attn_w1"].shape[0]
    G = 4 * H
    f32 = jnp.float32

    # --- weight preparation (pure layout work, done once per call) -------------
    w1 = params["attn_w1"].astype(f32)                     # (H, 2H + T-1)
    w1h = jnp.transpose(w1[:, :H])                         # (H, H)   hidden part
    w1c = jnp.transpose(w1[:, H:2 * H])                    # (H, H)   cell part
    w1x = jnp.transpose(w1[:, 2 * H:])                     # (T1, H)  series part
    b1 = params["attn_b1"].astype(f32).reshape(H)
    w2 = params["attn_w2"].astype(f32).reshape(H)
    # params["attn_b2"] is deliberately unused: a constant bias before softmax cancels exactly.
    wih = jnp.transpose(params["lstm_w_ih"]).astype(f32)   # (N, 4H)
    whh = jnp.transpose(params["lstm_w_hh"]).astype(f32)   # (H, 4H)
    bl = (params["lstm_b_ih"] + params["lstm_b_hh"]).astype(f32).reshape(1, G)

    # Fused state weight:  [h|c] @ w_state = [ h@Whh^T | tile_N(h@W1h^T + c@W1c^T) ]
    w_hc = jnp.concatenate([w1h, w1c], axis=0)                                   # (2H, H)
    w_state = jnp.concatenate(
        [jnp.concatenate([whh, jnp.zeros((H, G), f32)], axis=0),                 # (2H, 4H)
         jnp.tile(w_hc, (1, N))],                                                # (2H, N*H)
        axis=1)                                                                  # (2H, 4H + N*H)

    # Block-structured series weight so xpart comes out lane-dense in one matmul:
    #   w1xblk[t*N + n', n*H + j] = (n' == n) * w1x[t, j]
    eye = jnp.eye(N, dtype=f32)
    w1xblk = jnp.einsum("th,ij->tijh", w1x, eye).reshape(T1 * N, N * H)
    b1t = jnp.tile(b1.reshape(1, H), (1, N))                                     # (1, N*H)

    # Block-diagonal attention layer-2 weight: score[:, n] = z[:, n*H:(n+1)*H] @ w2
    w2blk = jnp.einsum("h,ij->ihj", w2, eye).reshape(N * H, N).astype(jnp.bfloat16)

    # --- batch tiling -----------------------------------------------------------
    # Pad batch to a multiple of 8 sublanes; aim for >=2 independent tiles so v7x
    # megacore can shard them, cap tiles at 256 rows (VMEM is a non-issue here).
    B8 = _round_up(B, 8)
    num_tiles = max(2, pl.cdiv(B8, 256))
    TB = _round_up(pl.cdiv(B8, num_tiles), 8)
    Bp = TB * num_tiles

    x_flat = X.astype(f32).reshape(B, T1 * N)              # free reshape, shipped once
    if Bp != B:
        x_flat = jnp.pad(x_flat, ((0, Bp - B), (0, 0)))    # padded rows are benign

    def full_spec(shape):
        return pl.BlockSpec(shape, lambda b: (0,) * len(shape))

    in_specs = [
        pl.BlockSpec((TB, T1 * N), lambda b: (b, 0)),      # x tile
        full_spec((T1 * N, N * H)),                        # w1xblk
        full_spec((1, N * H)),                             # b1 tiled
        full_spec((N * H, N)),                             # w2 block-diagonal (bf16)
        full_spec((2 * H, G + N * H)),                     # fused state weight
        full_spec((N, G)),                                 # wih
        full_spec((1, G)),                                 # lstm bias
    ]
    out_specs = (
        pl.BlockSpec((TB, T1 * N), lambda b: (b, 0)),
        pl.BlockSpec((TB, T1 * H), lambda b: (b, 0)),
    )

    iw_flat, ie_flat = pl.pallas_call(
        _encoder_darnn_kernel,
        grid=(num_tiles,),
        in_specs=in_specs,
        out_specs=out_specs,
        out_shape=(jax.ShapeDtypeStruct((Bp, T1 * N), f32),
                   jax.ShapeDtypeStruct((Bp, T1 * H), f32)),
        scratch_shapes=[pltpu.VMEM((TB, 2 * H), f32)],     # packed [h | c] state
        compiler_params=pltpu.CompilerParams(dimension_semantics=("parallel",)),
    )(x_flat, w1xblk, b1t, w2blk, w_state, wih, bl)

    # Back to the PyTorch convention: (B, T-1, N) and (B, T-1, H) via free reshapes.
    input_weighted = iw_flat[:B].reshape(B, T1, N)
    input_encoded = ie_flat[:B].reshape(B, T1, H)
    return input_weighted, input_encoded


def encoder_darnn_reference(X, params):
    """Pure-JAX reference mirroring the PyTorch forward, for validation."""
    B, T1, N = X.shape
    H = params["attn_w1"].shape[0]
    w1, b1 = params["attn_w1"], params["attn_b1"]
    w2, b2 = params["attn_w2"], params["attn_b2"]
    wih, whh = params["lstm_w_ih"], params["lstm_w_hh"]
    bih, bhh = params["lstm_b_ih"], params["lstm_b_hh"]

    h = jnp.zeros((B, H), jnp.float32)
    c = jnp.zeros((B, H), jnp.float32)
    Xp = jnp.transpose(X, (0, 2, 1))                       # (B, N, T-1)
    iw, ie = [], []
    for t in range(T1):
        hrep = jnp.broadcast_to(h[:, None, :], (B, N, H))
        crep = jnp.broadcast_to(c[:, None, :], (B, N, H))
        feat = jnp.concatenate([hrep, crep, Xp], axis=2).reshape(B * N, 2 * H + T1)
        z = jnp.tanh(feat @ w1.T + b1)
        s = (z @ w2.T + b2).reshape(B, N)
        attn = jax.nn.softmax(s, axis=1)
        wx = attn * X[:, t, :]
        gates = wx @ wih.T + bih + h @ whh.T + bhh
        i_g = jax.nn.sigmoid(gates[:, :H])
        f_g = jax.nn.sigmoid(gates[:, H:2 * H])
        g_g = jnp.tanh(gates[:, 2 * H:3 * H])
        o_g = jax.nn.sigmoid(gates[:, 3 * H:])
        c = f_g * c + i_g * g_g
        h = o_g * jnp.tanh(c)
        iw.append(wx)
        ie.append(h)
    return jnp.stack(iw, axis=1), jnp.stack(ie, axis=1)


if __name__ == "__main__":
    # Small DA-RNN config: input_size (driving series) N=8, hidden_size H=32, T=9.
    N, H, T = 8, 32, 9
    T1 = T - 1
    B = 4

    key = jax.random.PRNGKey(0)
    ks = jax.random.split(key, 9)

    def u(k, shape, bound):
        return jax.random.uniform(k, shape, jnp.float32, -bound, bound)

    b_attn = 1.0 / math.sqrt(2 * H + T1)
    b_lstm = 1.0 / math.sqrt(H)
    params = {
        "attn_w1": u(ks[0], (H, 2 * H + T1), b_attn),
        "attn_b1": u(ks[1], (H,), b_attn),
        "attn_w2": u(ks[2], (1, H), 1.0 / math.sqrt(H)),
        "attn_b2": u(ks[3], (1,), 1.0 / math.sqrt(H)),
        "lstm_w_ih": u(ks[4], (4 * H, N), b_lstm),
        "lstm_w_hh": u(ks[5], (4 * H, H), b_lstm),
        "lstm_b_ih": u(ks[6], (4 * H,), b_lstm),
        "lstm_b_hh": u(ks[7], (4 * H,), b_lstm),
    }
    X = jax.random.normal(ks[8], (B, T1, N), jnp.float32)

    input_weighted, input_encoded = jax.jit(encoder_darnn_forward)(X, params)
    jax.block_until_ready((input_weighted, input_encoded))

    iw_ref, ie_ref = encoder_darnn_reference(X, params)
    assert input_weighted.shape == (B, T1, N) and input_encoded.shape == (B, T1, H)
    assert jnp.allclose(input_weighted, iw_ref, rtol=5e-3, atol=5e-3)
    assert jnp.allclose(input_encoded, ie_ref, rtol=5e-3, atol=5e-3)

    print("KERNEL_OK")
</pallas_src>

<mosaic_0001>
module attributes {stable_mosaic.version = 11 : i64} {
  func.func @_encoder_darnn_kernel(%arg0: i32, %arg1: memref<8x64xf32, #tpu.memory_space<vmem>>, %arg2: memref<64x256xf32, #tpu.memory_space<vmem>>, %arg3: memref<1x256xf32, #tpu.memory_space<vmem>>, %arg4: memref<256x8xbf16, #tpu.memory_space<vmem>>, %arg5: memref<64x384xf32, #tpu.memory_space<vmem>>, %arg6: memref<8x128xf32, #tpu.memory_space<vmem>>, %arg7: memref<1x128xf32, #tpu.memory_space<vmem>>, %arg8: memref<8x64xf32, #tpu.memory_space<vmem>>, %arg9: memref<8x256xf32, #tpu.memory_space<vmem>>, %arg10: memref<8x64xf32, #tpu.memory_space<vmem>>) attributes {dimension_semantics = [#tpu.dimension_semantics<parallel>], iteration_bounds = array<i64: 2>, scalar_prefetch = 0 : i64, scratch_operands = 1 : i64, tpu.core_type = #tpu.core_type<tc>, window_params = [{transform_indices = @transform_0, window_bounds = array<i64: 8, 64>}, {pipeline_mode = #tpu.pipeline_mode<synchronous>, transform_indices = @transform_1, window_bounds = array<i64: 64, 256>}, {pipeline_mode = #tpu.pipeline_mode<synchronous>, transform_indices = @transform_2, window_bounds = array<i64: 1, 256>}, {pipeline_mode = #tpu.pipeline_mode<synchronous>, transform_indices = @transform_3, window_bounds = array<i64: 256, 8>}, {pipeline_mode = #tpu.pipeline_mode<synchronous>, transform_indices = @transform_4, window_bounds = array<i64: 64, 384>}, {pipeline_mode = #tpu.pipeline_mode<synchronous>, transform_indices = @transform_5, window_bounds = array<i64: 8, 128>}, {pipeline_mode = #tpu.pipeline_mode<synchronous>, transform_indices = @transform_6, window_bounds = array<i64: 1, 128>}, {transform_indices = @transform_7, window_bounds = array<i64: 8, 64>}, {transform_indices = @transform_8, window_bounds = array<i64: 8, 256>}]} {
    %c0 = arith.constant 0 : index
    %c0_0 = arith.constant 0 : index
    %0 = vector.load %arg1[%c0, %c0_0] : memref<8x64xf32, #tpu.memory_space<vmem>>, vector<8x64xf32>
    %c0_1 = arith.constant 0 : index
    %c0_2 = arith.constant 0 : index
    %1 = vector.load %arg2[%c0_1, %c0_2] : memref<64x256xf32, #tpu.memory_space<vmem>>, vector<64x256xf32>
    %cst = arith.constant dense<0.000000e+00> : vector<8x256xf32>
    %2 = tpu.matmul %0, %1, %cst {dimension_numbers = #tpu.dot_dimension_numbers<[1], [0], [0], [1], [0, 0, 1, 1], [], []>} : vector<8x64xf32>, vector<64x256xf32>, vector<8x256xf32> -> vector<8x256xf32>
    %c0_3 = arith.constant 0 : index
    %c0_4 = arith.constant 0 : index
    %3 = vector.load %arg3[%c0_3, %c0_4] : memref<1x256xf32, #tpu.memory_space<vmem>>, vector<1x256xf32>
    %4 = vector.broadcast %3 : vector<1x256xf32> to vector<8x256xf32>
    %5 = arith.addf %2, %4 : vector<8x256xf32>
    %cst_5 = arith.constant 0.000000e+00 : f32
    %6 = vector.broadcast %cst_5 : f32 to vector<8x64xf32>
    %c0_6 = arith.constant 0 : index
    %c0_7 = arith.constant 0 : index
    %7 = vector.load %arg10[%c0_6, %c0_7] : memref<8x64xf32, #tpu.memory_space<vmem>>, vector<8x64xf32>
    tpu.vector_store %arg10[%c0_6, %c0_7], %6 {strides = array<i32>} : memref<8x64xf32, #tpu.memory_space<vmem>>, vector<8x64xf32>,
    %c0_8 = arith.constant 0 : index
    %c0_9 = arith.constant 0 : index
    %8 = vector.load %arg10[%c0_8, %c0_9] : memref<8x64xf32, #tpu.memory_space<vmem>>, vector<8x64xf32>
    %9 = vector.extract_strided_slice %8 {offsets = [0, 32], sizes = [8, 32], strides = [1, 1]} : vector<8x64xf32> to vector<8x32xf32>
    %c0_10 = arith.constant 0 : index
    %c0_11 = arith.constant 0 : index
    %10 = vector.load %arg5[%c0_10, %c0_11] : memref<64x384xf32, #tpu.memory_space<vmem>>, vector<64x384xf32>
    %cst_12 = arith.constant dense<0.000000e+00> : vector<8x384xf32>
    %11 = tpu.matmul %8, %10, %cst_12 {dimension_numbers = #tpu.dot_dimension_numbers<[1], [0], [0], [1], [0, 0, 1, 1], [], []>} : vector<8x64xf32>, vector<64x384xf32>, vector<8x384xf32> -> vector<8x384xf32>
    %12 = vector.extract_strided_slice %11 {offsets = [0, 0], sizes = [8, 128], strides = [1, 1]} : vector<8x384xf32> to vector<8x128xf32>
    %13 = vector.extract_strided_slice %11 {offsets = [0, 128], sizes = [8, 256], strides = [1, 1]} : vector<8x384xf32> to vector<8x256xf32>
    %14 = arith.addf %5, %13 : vector<8x256xf32>
    %15 = math.tanh %14 : vector<8x256xf32>
    %16 = arith.truncf %15 : vector<8x256xf32> to vector<8x256xbf16>
    %c0_13 = arith.constant 0 : index
    %c0_14 = arith.constant 0 : index
    %17 = vector.load %arg4[%c0_13, %c0_14] : memref<256x8xbf16, #tpu.memory_space<vmem>>, vector<256x8xbf16>
    %cst_15 = arith.constant dense<0.000000e+00> : vector<8x8xf32>
    %18 = tpu.matmul %16, %17, %cst_15 {dimension_numbers = #tpu.dot_dimension_numbers<[1], [0], [0], [1], [0, 0, 1, 1], [], []>} : vector<8x256xbf16>, vector<256x8xbf16>, vector<8x8xf32> -> vector<8x8xf32>
    %19 = math.exp %18 : vector<8x8xf32>
    %cst_16 = arith.constant dense<0.000000e+00> : vector<8xf32>
    %20 = vector.multi_reduction <add>, %19, %cst_16 [1] : vector<8x8xf32> to vector<8xf32>
    %21 = vector.shape_cast %20 : vector<8xf32> to vector<8x1xf32>
    %22 = tpu.reciprocal %21 {approx = true} : vector<8x1xf32> -> vector<8x1xf32>
    %23 = vector.broadcast %22 : vector<8x1xf32> to vector<8x8xf32>
    %24 = arith.mulf %19, %23 : vector<8x8xf32>
    %25 = vector.extract_strided_slice %0 {offsets = [0, 0], sizes = [8, 8], strides = [1, 1]} : vector<8x64xf32> to vector<8x8xf32>
    %26 = arith.mulf %24, %25 : vector<8x8xf32>
    %c0_17 = arith.constant 0 : index
    %c0_18 = arith.constant 0 : index
    %27 = vector.load %arg6[%c0_17, %c0_18] : memref<8x128xf32, #tpu.memory_space<vmem>>, vector<8x128xf32>
    %cst_19 = arith.constant dense<0.000000e+00> : vector<8x128xf32>
    %28 = tpu.matmul %26, %27, %cst_19 {dimension_numbers = #tpu.dot_dimension_numbers<[1], [0], [0], [1], [0, 0, 1, 1], [], []>} : vector<8x8xf32>, vector<8x128xf32>, vector<8x128xf32> -> vector<8x128xf32>
    %29 = arith.addf %28, %12 : vector<8x128xf32>
    %c0_20 = arith.constant 0 : index
    %c0_21 = arith.constant 0 : index
    %30 = vector.load %arg7[%c0_20, %c0_21] : memref<1x128xf32, #tpu.memory_space<vmem>>, vector<1x128xf32>
    %31 = vector.broadcast %30 : vector<1x128xf32> to vector<8x128xf32>
    %32 = arith.addf %29, %31 : vector<8x128xf32>
    %33 = arith.negf %32 : vector<8x128xf32>
    %34 = math.exp %33 : vector<8x128xf32>
    %cst_22 = arith.constant 1.000000e+00 : f32
    %35 = vector.broadcast %cst_22 : f32 to vector<8x128xf32>
    %36 = arith.addf %35, %34 : vector<8x128xf32>
    %37 = arith.divf %35, %36 : vector<8x128xf32>
    %38 = vector.extract_strided_slice %37 {offsets = [0, 0], sizes = [8, 32], strides = [1, 1]} : vector<8x128xf32> to vector<8x32xf32>
    %39 = vector.extract_strided_slice %37 {offsets = [0, 32], sizes = [8, 32], strides = [1, 1]} : vector<8x128xf32> to vector<8x32xf32>
    %40 = vector.extract_strided_slice %37 {offsets = [0, 96], sizes = [8, 32], strides = [1, 1]} : vector<8x128xf32> to vector<8x32xf32>
    %41 = vector.extract_strided_slice %32 {offsets = [0, 64], sizes = [8, 32], strides = [1, 1]} : vector<8x128xf32> to vector<8x32xf32>
    %42 = math.tanh %41 : vector<8x32xf32>
    %43 = arith.mulf %39, %9 : vector<8x32xf32>
    %44 = arith.mulf %38, %42 : vector<8x32xf32>
    %45 = arith.addf %43, %44 : vector<8x32xf32>
    %46 = math.tanh %45 : vector<8x32xf32>
    %47 = arith.mulf %40, %46 : vector<8x32xf32>
    %c0_23 = arith.constant 0 : index
    %c0_24 = arith.constant 0 : index
    %48 = vector.load %arg10[%c0_23, %c0_24] : memref<8x64xf32, #tpu.memory_space<vmem>>, vector<8x32xf32>
    tpu.vector_store %arg10[%c0_23, %c0_24], %47 {strides = array<i32>} : memref<8x64xf32, #tpu.memory_space<vmem>>, vector<8x32xf32>,
    %c0_25 = arith.constant 0 : index
    %c32 = arith.constant 32 : index
    %49 = vector.load %arg10[%c0_25, %c32] : memref<8x64xf32, #tpu.memory_space<vmem>>, vector<8x32xf32>
    tpu.vector_store %arg10[%c0_25, %c32], %45 {strides = array<i32>} : memref<8x64xf32, #tpu.memory_space<vmem>>, vector<8x32xf32>,
    %c0_26 = arith.constant 0 : index
    %c0_27 = arith.constant 0 : index
    %50 = vector.load %arg8[%c0_26, %c0_27] : memref<8x64xf32, #tpu.memory_space<vmem>>, vector<8x8xf32>
    tpu.vector_store %arg8[%c0_26, %c0_27], %26 {strides = array<i32>} : memref<8x64xf32, #tpu.memory_space<vmem>>, vector<8x8xf32>,
    %c0_28 = arith.constant 0 : index
    %c0_29 = arith.constant 0 : index
    %51 = vector.load %arg9[%c0_28, %c0_29] : memref<8x256xf32, #tpu.memory_space<vmem>>, vector<8x32xf32>
    tpu.vector_store %arg9[%c0_28, %c0_29], %47 {strides = array<i32>} : memref<8x256xf32, #tpu.memory_space<vmem>>, vector<8x32xf32>,
    %c0_30 = arith.constant 0 : index
    %c0_31 = arith.constant 0 : index
    %52 = vector.load %arg10[%c0_30, %c0_31] : memref<8x64xf32, #tpu.memory_space<vmem>>, vector<8x64xf32>
    %53 = vector.extract_strided_slice %52 {offsets = [0, 32], sizes = [8, 32], strides = [1, 1]} : vector<8x64xf32> to vector<8x32xf32>
    %c0_32 = arith.constant 0 : index
    %c0_33 = arith.constant 0 : index
    %54 = vector.load %arg5[%c0_32, %c0_33] : memref<64x384xf32, #tpu.memory_space<vmem>>, vector<64x384xf32>
    %cst_34 = arith.constant dense<0.000000e+00> : vector<8x384xf32>
    %55 = tpu.matmul %52, %54, %cst_34 {dimension_numbers = #tpu.dot_dimension_numbers<[1], [0], [0], [1], [0, 0, 1, 1], [], []>} : vector<8x64xf32>, vector<64x384xf32>, vector<8x384xf32> -> vector<8x384xf32>
    %56 = vector.extract_strided_slice %55 {offsets = [0, 0], sizes = [8, 128], strides = [1, 1]} : vector<8x384xf32> to vector<8x128xf32>
    %57 = vector.extract_strided_slice %55 {offsets = [0, 128], sizes = [8, 256], strides = [1, 1]} : vector<8x384xf32> to vector<8x256xf32>
    %58 = arith.addf %5, %57 : vector<8x256xf32>
    %59 = math.tanh %58 : vector<8x256xf32>
    %60 = arith.truncf %59 : vector<8x256xf32> to vector<8x256xbf16>
    %c0_35 = arith.constant 0 : index
    %c0_36 = arith.constant 0 : index
    %61 = vector.load %arg4[%c0_35, %c0_36] : memref<256x8xbf16, #tpu.memory_space<vmem>>, vector<256x8xbf16>
    %cst_37 = arith.constant dense<0.000000e+00> : vector<8x8xf32>
    %62 = tpu.matmul %60, %61, %cst_37 {dimension_numbers = #tpu.dot_dimension_numbers<[1], [0], [0], [1], [0, 0, 1, 1], [], []>} : vector<8x256xbf16>, vector<256x8xbf16>, vector<8x8xf32> -> vector<8x8xf32>
    %63 = math.exp %62 : vector<8x8xf32>
    %cst_38 = arith.constant dense<0.000000e+00> : vector<8xf32>
    %64 = vector.multi_reduction <add>, %63, %cst_38 [1] : vector<8x8xf32> to vector<8xf32>
    %65 = vector.shape_cast %64 : vector<8xf32> to vector<8x1xf32>
    %66 = tpu.reciprocal %65 {approx = true} : vector<8x1xf32> -> vector<8x1xf32>
    %67 = vector.broadcast %66 : vector<8x1xf32> to vector<8x8xf32>
    %68 = arith.mulf %63, %67 : vector<8x8xf32>
    %69 = vector.extract_strided_slice %0 {offsets = [0, 8], sizes = [8, 8], strides = [1, 1]} : vector<8x64xf32> to vector<8x8xf32>
    %70 = arith.mulf %68, %69 : vector<8x8xf32>
    %c0_39 = arith.constant 0 : index
    %c0_40 = arith.constant 0 : index
    %71 = vector.load %arg6[%c0_39, %c0_40] : memref<8x128xf32, #tpu.memory_space<vmem>>, vector<8x128xf32>
    %cst_41 = arith.constant dense<0.000000e+00> : vector<8x128xf32>
    %72 = tpu.matmul %70, %71, %cst_41 {dimension_numbers = #tpu.dot_dimension_numbers<[1], [0], [0], [1], [0, 0, 1, 1], [], []>} : vector<8x8xf32>, vector<8x128xf32>, vector<8x128xf32> -> vector<8x128xf32>
    %73 = arith.addf %72, %56 : vector<8x128xf32>
    %c0_42 = arith.constant 0 : index
    %c0_43 = arith.constant 0 : index
    %74 = vector.load %arg7[%c0_42, %c0_43] : memref<1x128xf32, #tpu.memory_space<vmem>>, vector<1x128xf32>
    %75 = vector.broadcast %74 : vector<1x128xf32> to vector<8x128xf32>
    %76 = arith.addf %73, %75 : vector<8x128xf32>
    %77 = arith.negf %76 : vector<8x128xf32>
    %78 = math.exp %77 : vector<8x128xf32>
    %cst_44 = arith.constant 1.000000e+00 : f32
    %79 = vector.broadcast %cst_44 : f32 to vector<8x128xf32>
    %80 = arith.addf %79, %78 : vector<8x128xf32>
    %81 = arith.divf %79, %80 : vector<8x128xf32>
    %82 = vector.extract_strided_slice %81 {offsets = [0, 0], sizes = [8, 32], strides = [1, 1]} : vector<8x128xf32> to vector<8x32xf32>
    %83 = vector.extract_strided_slice %81 {offsets = [0, 32], sizes = [8, 32], strides = [1, 1]} : vector<8x128xf32> to vector<8x32xf32>
    %84 = vector.extract_strided_slice %81 {offsets = [0, 96], sizes = [8, 32], strides = [1, 1]} : vector<8x128xf32> to vector<8x32xf32>
    %85 = vector.extract_strided_slice %76 {offsets = [0, 64], sizes = [8, 32], strides = [1, 1]} : vector<8x128xf32> to vector<8x32xf32>
    %86 = math.tanh %85 : vector<8x32xf32>
    %87 = arith.mulf %83, %53 : vector<8x32xf32>
    %88 = arith.mulf %82, %86 : vector<8x32xf32>
    %89 = arith.addf %87, %88 : vector<8x32xf32>
    %90 = math.tanh %89 : vector<8x32xf32>
    %91 = arith.mulf %84, %90 : vector<8x32xf32>
    %c0_45 = arith.constant 0 : index
    %c0_46 = arith.constant 0 : index
    %92 = vector.load %arg10[%c0_45, %c0_46] : memref<8x64xf32, #tpu.memory_space<vmem>>, vector<8x32xf32>
    tpu.vector_store %arg10[%c0_45, %c0_46], %91 {strides = array<i32>} : memref<8x64xf32, #tpu.memory_space<vmem>>, vector<8x32xf32>,
    %c0_47 = arith.constant 0 : index
    %c32_48 = arith.constant 32 : index
    %93 = vector.load %arg10[%c0_47, %c32_48] : memref<8x64xf32, #tpu.memory_space<vmem>>, vector<8x32xf32>
    tpu.vector_store %arg10[%c0_47, %c32_48], %89 {strides = array<i32>} : memref<8x64xf32, #tpu.memory_space<vmem>>, vector<8x32xf32>,
    %c0_49 = arith.constant 0 : index
    %c8 = arith.constant 8 : index
    %94 = vector.load %arg8[%c0_49, %c8] : memref<8x64xf32, #tpu.memory_space<vmem>>, vector<8x8xf32>
    tpu.vector_store %arg8[%c0_49, %c8], %70 {strides = array<i32>} : memref<8x64xf32, #tpu.memory_space<vmem>>, vector<8x8xf32>,
    %c0_50 = arith.constant 0 : index
    %c32_51 = arith.constant 32 : index
    %95 = vector.load %arg9[%c0_50, %c32_51] : memref<8x256xf32, #tpu.memory_space<vmem>>, vector<8x32xf32>
    tpu.vector_store %arg9[%c0_50, %c32_51], %91 {strides = array<i32>} : memref<8x256xf32, #tpu.memory_space<vmem>>, vector<8x32xf32>,
    %c0_52 = arith.constant 0 : index
    %c0_53 = arith.constant 0 : index
    %96 = vector.load %arg10[%c0_52, %c0_53] : memref<8x64xf32, #tpu.memory_space<vmem>>, vector<8x64xf32>
    %97 = vector.extract_strided_slice %96 {offsets = [0, 32], sizes = [8, 32], strides = [1, 1]} : vector<8x64xf32> to vector<8x32xf32>
    %c0_54 = arith.constant 0 : index
    %c0_55 = arith.constant 0 : index
    %98 = vector.load %arg5[%c0_54, %c0_55] : memref<64x384xf32, #tpu.memory_space<vmem>>, vector<64x384xf32>
    %cst_56 = arith.constant dense<0.000000e+00> : vector<8x384xf32>
    %99 = tpu.matmul %96, %98, %cst_56 {dimension_numbers = #tpu.dot_dimension_numbers<[1], [0], [0], [1], [0, 0, 1, 1], [], []>} : vector<8x64xf32>, vector<64x384xf32>, vector<8x384xf32> -> vector<8x384xf32>
    %100 = vector.extract_strided_slice %99 {offsets = [0, 0], sizes = [8, 128], strides = [1, 1]} : vector<8x384xf32> to vector<8x128xf32>
    %101 = vector.extract_strided_slice %99 {offsets = [0, 128], sizes = [8, 256], strides = [1, 1]} : vector<8x384xf32> to vector<8x256xf32>
    %102 = arith.addf %5, %101 : vector<8x256xf32>
    %103 = math.tanh %102 : vector<8x256xf32>
    %104 = arith.truncf %103 : vector<8x256xf32> to vector<8x256xbf16>
    %c0_57 = arith.constant 0 : index
    %c0_58 = arith.constant 0 : index
    %105 = vector.load %arg4[%c0_57, %c0_58] : memref<256x8xbf16, #tpu.memory_space<vmem>>, vector<256x8xbf16>
    %cst_59 = arith.constant dense<0.000000e+00> : vector<8x8xf32>
    %106 = tpu.matmul %104, %105, %cst_59 {dimension_numbers = #tpu.dot_dimension_numbers<[1], [0], [0], [1], [0, 0, 1, 1], [], []>} : vector<8x256xbf16>, vector<256x8xbf16>, vector<8x8xf32> -> vector<8x8xf32>
    %107 = math.exp %106 : vector<8x8xf32>
    %cst_60 = arith.constant dense<0.000000e+00> : vector<8xf32>
    %108 = vector.multi_reduction <add>, %107, %cst_60 [1] : vector<8x8xf32> to vector<8xf32>
    %109 = vector.shape_cast %108 : vector<8xf32> to vector<8x1xf32>
    %110 = tpu.reciprocal %109 {approx = true} : vector<8x1xf32> -> vector<8x1xf32>
    %111 = vector.broadcast %110 : vector<8x1xf32> to vector<8x8xf32>
    %112 = arith.mulf %107, %111 : vector<8x8xf32>
    %113 = vector.extract_strided_slice %0 {offsets = [0, 16], sizes = [8, 8], strides = [1, 1]} : vector<8x64xf32> to vector<8x8xf32>
    %114 = arith.mulf %112, %113 : vector<8x8xf32>
    %c0_61 = arith.constant 0 : index
    %c0_62 = arith.constant 0 : index
    %115 = vector.load %arg6[%c0_61, %c0_62] : memref<8x128xf32, #tpu.memory_space<vmem>>, vector<8x128xf32>
    %cst_63 = arith.constant dense<0.000000e+00> : vector<8x128xf32>
    %116 = tpu.matmul %114, %115, %cst_63 {dimension_numbers = #tpu.dot_dimension_numbers<[1], [0], [0], [1], [0, 0, 1, 1], [], []>} : vector<8x8xf32>, vector<8x128xf32>, vector<8x128xf32> -> vector<8x128xf32>
    %117 = arith.addf %116, %100 : vector<8x128xf32>
    %c0_64 = arith.constant 0 : index
    %c0_65 = arith.constant 0 : index
    %118 = vector.load %arg7[%c0_64, %c0_65] : memref<1x128xf32, #tpu.memory_space<vmem>>, vector<1x128xf32>
    %119 = vector.broadcast %118 : vector<1x128xf32> to vector<8x128xf32>
    %120 = arith.addf %117, %119 : vector<8x128xf32>
    %121 = arith.negf %120 : vector<8x128xf32>
    %122 = math.exp %121 : vector<8x128xf32>
    %cst_66 = arith.constant 1.000000e+00 : f32
    %123 = vector.broadcast %cst_66 : f32 to vector<8x128xf32>
    %124 = arith.addf %123, %122 : vector<8x128xf32>
    %125 = arith.divf %123, %124 : vector<8x128xf32>
    %126 = vector.extract_strided_slice %125 {offsets = [0, 0], sizes = [8, 32], strides = [1, 1]} : vector<8x128xf32> to vector<8x32xf32>
    %127 = vector.extract_strided_slice %125 {offsets = [0, 32], sizes = [8, 32], strides = [1, 1]} : vector<8x128xf32> to vector<8x32xf32>
    %128 = vector.extract_strided_slice %125 {offsets = [0, 96], sizes = [8, 32], strides = [1, 1]} : vector<8x128xf32> to vector<8x32xf32>
    %129 = vector.extract_strided_slice %120 {offsets = [0, 64], sizes = [8, 32], strides = [1, 1]} : vector<8x128xf32> to vector<8x32xf32>
    %130 = math.tanh %129 : vector<8x32xf32>
    %131 = arith.mulf %127, %97 : vector<8x32xf32>
    %132 = arith.mulf %126, %130 : vector<8x32xf32>
    %133 = arith.addf %131, %132 : vector<8x32xf32>
    %134 = math.tanh %133 : vector<8x32xf32>
    %135 = arith.mulf %128, %134 : vector<8x32xf32>
    %c0_67 = arith.constant 0 : index
    %c0_68 = arith.constant 0 : index
    %136 = vector.load %arg10[%c0_67, %c0_68] : memref<8x64xf32, #tpu.memory_space<vmem>>, vector<8x32xf32>
    tpu.vector_store %arg10[%c0_67, %c0_68], %135 {strides = array<i32>} : memref<8x64xf32, #tpu.memory_space<vmem>>, vector<8x32xf32>,
    %c0_69 = arith.constant 0 : index
    %c32_70 = arith.constant 32 : index
    %137 = vector.load %arg10[%c0_69, %c32_70] : memref<8x64xf32, #tpu.memory_space<vmem>>, vector<8x32xf32>
    tpu.vector_store %arg10[%c0_69, %c32_70], %133 {strides = array<i32>} : memref<8x64xf32, #tpu.memory_space<vmem>>, vector<8x32xf32>,
    %c0_71 = arith.constant 0 : index
    %c16 = arith.constant 16 : index
    %138 = vector.load %arg8[%c0_71, %c16] : memref<8x64xf32, #tpu.memory_space<vmem>>, vector<8x8xf32>
    tpu.vector_store %arg8[%c0_71, %c16], %114 {strides = array<i32>} : memref<8x64xf32, #tpu.memory_space<vmem>>, vector<8x8xf32>,
    %c0_72 = arith.constant 0 : index
    %c64 = arith.constant 64 : index
    %139 = vector.load %arg9[%c0_72, %c64] : memref<8x256xf32, #tpu.memory_space<vmem>>, vector<8x32xf32>
    tpu.vector_store %arg9[%c0_72, %c64], %135 {strides = array<i32>} : memref<8x256xf32, #tpu.memory_space<vmem>>, vector<8x32xf32>,
    %c0_73 = arith.constant 0 : index
    %c0_74 = arith.constant 0 : index
    %140 = vector.load %arg10[%c0_73, %c0_74] : memref<8x64xf32, #tpu.memory_space<vmem>>, vector<8x64xf32>
    %141 = vector.extract_strided_slice %140 {offsets = [0, 32], sizes = [8, 32], strides = [1, 1]} : vector<8x64xf32> to vector<8x32xf32>
    %c0_75 = arith.constant 0 : index
    %c0_76 = arith.constant 0 : index
    %142 = vector.load %arg5[%c0_75, %c0_76] : memref<64x384xf32, #tpu.memory_space<vmem>>, vector<64x384xf32>
    %cst_77 = arith.constant dense<0.000000e+00> : vector<8x384xf32>
    %143 = tpu.matmul %140, %142, %cst_77 {dimension_numbers = #tpu.dot_dimension_numbers<[1], [0], [0], [1], [0, 0, 1, 1], [], []>} : vector<8x64xf32>, vector<64x384xf32>, vector<8x384xf32> -> vector<8x384xf32>
    %144 = vector.extract_strided_slice %143 {offsets = [0, 0], sizes = [8, 128], strides = [1, 1]} : vector<8x384xf32> to vector<8x128xf32>
    %145 = vector.extract_strided_slice %143 {offsets = [0, 128], sizes = [8, 256], strides = [1, 1]} : vector<8x384xf32> to vector<8x256xf32>
    %146 = arith.addf %5, %145 : vector<8x256xf32>
    %147 = math.tanh %146 : vector<8x256xf32>
    %148 = arith.truncf %147 : vector<8x256xf32> to vector<8x256xbf16>
    %c0_78 = arith.constant 0 : index
    %c0_79 = arith.constant 0 : index
    %149 = vector.load %arg4[%c0_78, %c0_79] : memref<256x8xbf16, #tpu.memory_space<vmem>>, vector<256x8xbf16>
    %cst_80 = arith.constant dense<0.000000e+00> : vector<8x8xf32>
    %150 = tpu.matmul %148, %149, %cst_80 {dimension_numbers = #tpu.dot_dimension_numbers<[1], [0], [0], [1], [0, 0, 1, 1], [], []>} : vector<8x256xbf16>, vector<256x8xbf16>, vector<8x8xf32> -> vector<8x8xf32>
    %151 = math.exp %150 : vector<8x8xf32>
    %cst_81 = arith.constant dense<0.000000e+00> : vector<8xf32>
    %152 = vector.multi_reduction <add>, %151, %cst_81 [1] : vector<8x8xf32> to vector<8xf32>
    %153 = vector.shape_cast %152 : vector<8xf32> to vector<8x1xf32>
    %154 = tpu.reciprocal %153 {approx = true} : vector<8x1xf32> -> vector<8x1xf32>
    %155 = vector.broadcast %154 : vector<8x1xf32> to vector<8x8xf32>
    %156 = arith.mulf %151, %155 : vector<8x8xf32>
    %157 = vector.extract_strided_slice %0 {offsets = [0, 24], sizes = [8, 8], strides = [1, 1]} : vector<8x64xf32> to vector<8x8xf32>
    %158 = arith.mulf %156, %157 : vector<8x8xf32>
    %c0_82 = arith.constant 0 : index
    %c0_83 = arith.constant 0 : index
    %159 = vector.load %arg6[%c0_82, %c0_83] : memref<8x128xf32, #tpu.memory_space<vmem>>, vector<8x128xf32>
    %cst_84 = arith.constant dense<0.000000e+00> : vector<8x128xf32>
    %160 = tpu.matmul %158, %159, %cst_84 {dimension_numbers = #tpu.dot_dimension_numbers<[1], [0], [0], [1], [0, 0, 1, 1], [], []>} : vector<8x8xf32>, vector<8x128xf32>, vector<8x128xf32> -> vector<8x128xf32>
    %161 = arith.addf %160, %144 : vector<8x128xf32>
    %c0_85 = arith.constant 0 : index
    %c0_86 = arith.constant 0 : index
    %162 = vector.load %arg7[%c0_85, %c0_86] : memref<1x128xf32, #tpu.memory_space<vmem>>, vector<1x128xf32>
    %163 = vector.broadcast %162 : vector<1x128xf32> to vector<8x128xf32>
    %164 = arith.addf %161, %163 : vector<8x128xf32>
    %165 = arith.negf %164 : vector<8x128xf32>
    %166 = math.exp %165 : vector<8x128xf32>
    %cst_87 = arith.constant 1.000000e+00 : f32
    %167 = vector.broadcast %cst_87 : f32 to vector<8x128xf32>
    %168 = arith.addf %167, %166 : vector<8x128xf32>
    %169 = arith.divf %167, %168 : vector<8x128xf32>
    %170 = vector.extract_strided_slice %169 {offsets = [0, 0], sizes = [8, 32], strides = [1, 1]} : vector<8x128xf32> to vector<8x32xf32>
    %171 = vector.extract_strided_slice %169 {offsets = [0, 32], sizes = [8, 32], strides = [1, 1]} : vector<8x128xf32> to vector<8x32xf32>
    %172 = vector.extract_strided_slice %169 {offsets = [0, 96], sizes = [8, 32], strides = [1, 1]} : vector<8x128xf32> to vector<8x32xf32>
    %173 = vector.extract_strided_slice %164 {offsets = [0, 64], sizes = [8, 32], strides = [1, 1]} : vector<8x128xf32> to vector<8x32xf32>
    %174 = math.tanh %173 : vector<8x32xf32>
    %175 = arith.mulf %171, %141 : vector<8x32xf32>
    %176 = arith.mulf %170, %174 : vector<8x32xf32>
    %177 = arith.addf %175, %176 : vector<8x32xf32>
    %178 = math.tanh %177 : vector<8x32xf32>
    %179 = arith.mulf %172, %178 : vector<8x32xf32>
    %c0_88 = arith.constant 0 : index
    %c0_89 = arith.constant 0 : index
    %180 = vector.load %arg10[%c0_88, %c0_89] : memref<8x64xf32, #tpu.memory_space<vmem>>, vector<8x32xf32>
    tpu.vector_store %arg10[%c0_88, %c0_89], %179 {strides = array<i32>} : memref<8x64xf32, #tpu.memory_space<vmem>>, vector<8x32xf32>,
    %c0_90 = arith.constant 0 : index
    %c32_91 = arith.constant 32 : index
    %181 = vector.load %arg10[%c0_90, %c32_91] : memref<8x64xf32, #tpu.memory_space<vmem>>, vector<8x32xf32>
    tpu.vector_store %arg10[%c0_90, %c32_91], %177 {strides = array<i32>} : memref<8x64xf32, #tpu.memory_space<vmem>>, vector<8x32xf32>,
    %c0_92 = arith.constant 0 : index
    %c24 = arith.constant 24 : index
    %182 = vector.load %arg8[%c0_92, %c24] : memref<8x64xf32, #tpu.memory_space<vmem>>, vector<8x8xf32>
    tpu.vector_store %arg8[%c0_92, %c24], %158 {strides = array<i32>} : memref<8x64xf32, #tpu.memory_space<vmem>>, vector<8x8xf32>,
    %c0_93 = arith.constant 0 : index
    %c96 = arith.constant 96 : index
    %183 = vector.load %arg9[%c0_93, %c96] : memref<8x256xf32, #tpu.memory_space<vmem>>, vector<8x32xf32>
    tpu.vector_store %arg9[%c0_93, %c96], %179 {strides = array<i32>} : memref<8x256xf32, #tpu.memory_space<vmem>>, vector<8x32xf32>,
    %c0_94 = arith.constant 0 : index
    %c0_95 = arith.constant 0 : index
    %184 = vector.load %arg10[%c0_94, %c0_95] : memref<8x64xf32, #tpu.memory_space<vmem>>, vector<8x64xf32>
    %185 = vector.extract_strided_slice %184 {offsets = [0, 32], sizes = [8, 32], strides = [1, 1]} : vector<8x64xf32> to vector<8x32xf32>
    %c0_96 = arith.constant 0 : index
    %c0_97 = arith.constant 0 : index
    %186 = vector.load %arg5[%c0_96, %c0_97] : memref<64x384xf32, #tpu.memory_space<vmem>>, vector<64x384xf32>
    %cst_98 = arith.constant dense<0.000000e+00> : vector<8x384xf32>
    %187 = tpu.matmul %184, %186, %cst_98 {dimension_numbers = #tpu.dot_dimension_numbers<[1], [0], [0], [1], [0, 0, 1, 1], [], []>} : vector<8x64xf32>, vector<64x384xf32>, vector<8x384xf32> -> vector<8x384xf32>
    %188 = vector.extract_strided_slice %187 {offsets = [0, 0], sizes = [8, 128], strides = [1, 1]} : vector<8x384xf32> to vector<8x128xf32>
    %189 = vector.extract_strided_slice %187 {offsets = [0, 128], sizes = [8, 256], strides = [1, 1]} : vector<8x384xf32> to vector<8x256xf32>
    %190 = arith.addf %5, %189 : vector<8x256xf32>
    %191 = math.tanh %190 : vector<8x256xf32>
    %192 = arith.truncf %191 : vector<8x256xf32> to vector<8x256xbf16>
    %c0_99 = arith.constant 0 : index
    %c0_100 = arith.constant 0 : index
    %193 = vector.load %arg4[%c0_99, %c0_100] : memref<256x8xbf16, #tpu.memory_space<vmem>>, vector<256x8xbf16>
    %cst_101 = arith.constant dense<0.000000e+00> : vector<8x8xf32>
    %194 = tpu.matmul %192, %193, %cst_101 {dimension_numbers = #tpu.dot_dimension_numbers<[1], [0], [0], [1], [0, 0, 1, 1], [], []>} : vector<8x256xbf16>, vector<256x8xbf16>, vector<8x8xf32> -> vector<8x8xf32>
    %195 = math.exp %194 : vector<8x8xf32>
    %cst_102 = arith.constant dense<0.000000e+00> : vector<8xf32>
    %196 = vector.multi_reduction <add>, %195, %cst_102 [1] : vector<8x8xf32> to vector<8xf32>
    %197 = vector.shape_cast %196 : vector<8xf32> to vector<8x1xf32>
    %198 = tpu.reciprocal %197 {approx = true} : vector<8x1xf32> -> vector<8x1xf32>
    %199 = vector.broadcast %198 : vector<8x1xf32> to vector<8x8xf32>
    %200 = arith.mulf %195, %199 : vector<8x8xf32>
    %201 = vector.extract_strided_slice %0 {offsets = [0, 32], sizes = [8, 8], strides = [1, 1]} : vector<8x64xf32> to vector<8x8xf32>
    %202 = arith.mulf %200, %201 : vector<8x8xf32>
    %c0_103 = arith.constant 0 : index
    %c0_104 = arith.constant 0 : index
    %203 = vector.load %arg6[%c0_103, %c0_104] : memref<8x128xf32, #tpu.memory_space<vmem>>, vector<8x128xf32>
    %cst_105 = arith.constant dense<0.000000e+00> : vector<8x128xf32>
    %204 = tpu.matmul %202, %203, %cst_105 {dimension_numbers = #tpu.dot_dimension_numbers<[1], [0], [0], [1], [0, 0, 1, 1], [], []>} : vector<8x8xf32>, vector<8x128xf32>, vector<8x128xf32> -> vector<8x128xf32>
    %205 = arith.addf %204, %188 : vector<8x128xf32>
    %c0_106 = arith.constant 0 : index
    %c0_107 = arith.constant 0 : index
    %206 = vector.load %arg7[%c0_106, %c0_107] : memref<1x128xf32, #tpu.memory_space<vmem>>, vector<1x128xf32>
    %207 = vector.broadcast %206 : vector<1x128xf32> to vector<8x128xf32>
    %208 = arith.addf %205, %207 : vector<8x128xf32>
    %209 = arith.negf %208 : vector<8x128xf32>
    %210 = math.exp %209 : vector<8x128xf32>
    %cst_108 = arith.constant 1.000000e+00 : f32
    %211 = vector.broadcast %cst_108 : f32 to vector<8x128xf32>
    %212 = arith.addf %211, %210 : vector<8x128xf32>
    %213 = arith.divf %211, %212 : vector<8x128xf32>
    %214 = vector.extract_strided_slice %213 {offsets = [0, 0], sizes = [8, 32], strides = [1, 1]} : vector<8x128xf32> to vector<8x32xf32>
    %215 = vector.extract_strided_slice %213 {offsets = [0, 32], sizes = [8, 32], strides = [1, 1]} : vector<8x128xf32> to vector<8x32xf32>
    %216 = vector.extract_strided_slice %213 {offsets = [0, 96], sizes = [8, 32], strides = [1, 1]} : vector<8x128xf32> to vector<8x32xf32>
    %217 = vector.extract_strided_slice %208 {offsets = [0, 64], sizes = [8, 32], strides = [1, 1]} : vector<8x128xf32> to vector<8x32xf32>
    %218 = math.tanh %217 : vector<8x32xf32>
    %219 = arith.mulf %215, %185 : vector<8x32xf32>
    %220 = arith.mulf %214, %218 : vector<8x32xf32>
    %221 = arith.addf %219, %220 : vector<8x32xf32>
    %222 = math.tanh %221 : vector<8x32xf32>
    %223 = arith.mulf %216, %222 : vector<8x32xf32>
    %c0_109 = arith.constant 0 : index
    %c0_110 = arith.constant 0 : index
    %224 = vector.load %arg10[%c0_109, %c0_110] : memref<8x64xf32, #tpu.memory_space<vmem>>, vector<8x32xf32>
    tpu.vector_store %arg10[%c0_109, %c0_110], %223 {strides = array<i32>} : memref<8x64xf32, #tpu.memory_space<vmem>>, vector<8x32xf32>,
    %c0_111 = arith.constant 0 : index
    %c32_112 = arith.constant 32 : index
    %225 = vector.load %arg10[%c0_111, %c32_112] : memref<8x64xf32, #tpu.memory_space<vmem>>, vector<8x32xf32>
    tpu.vector_store %arg10[%c0_111, %c32_112], %221 {strides = array<i32>} : memref<8x64xf32, #tpu.memory_space<vmem>>, vector<8x32xf32>,
    %c0_113 = arith.constant 0 : index
    %c32_114 = arith.constant 32 : index
    %226 = vector.load %arg8[%c0_113, %c32_114] : memref<8x64xf32, #tpu.memory_space<vmem>>, vector<8x8xf32>
    tpu.vector_store %arg8[%c0_113, %c32_114], %202 {strides = array<i32>} : memref<8x64xf32, #tpu.memory_space<vmem>>, vector<8x8xf32>,
    %c0_115 = arith.constant 0 : index
    %c128 = arith.constant 128 : index
    %227 = vector.load %arg9[%c0_115, %c128] : memref<8x256xf32, #tpu.memory_space<vmem>>, vector<8x32xf32>
    tpu.vector_store %arg9[%c0_115, %c128], %223 {strides = array<i32>} : memref<8x256xf32, #tpu.memory_space<vmem>>, vector<8x32xf32>,
    %c0_116 = arith.constant 0 : index
    %c0_117 = arith.constant 0 : index
    %228 = vector.load %arg10[%c0_116, %c0_117] : memref<8x64xf32, #tpu.memory_space<vmem>>, vector<8x64xf32>
    %229 = vector.extract_strided_slice %228 {offsets = [0, 32], sizes = [8, 32], strides = [1, 1]} : vector<8x64xf32> to vector<8x32xf32>
    %c0_118 = arith.constant 0 : index
    %c0_119 = arith.constant 0 : index
    %230 = vector.load %arg5[%c0_118, %c0_119] : memref<64x384xf32, #tpu.memory_space<vmem>>, vector<64x384xf32>
    %cst_120 = arith.constant dense<0.000000e+00> : vector<8x384xf32>
    %231 = tpu.matmul %228, %230, %cst_120 {dimension_numbers = #tpu.dot_dimension_numbers<[1], [0], [0], [1], [0, 0, 1, 1], [], []>} : vector<8x64xf32>, vector<64x384xf32>, vector<8x384xf32> -> vector<8x384xf32>
    %232 = vector.extract_strided_slice %231 {offsets = [0, 0], sizes = [8, 128], strides = [1, 1]} : vector<8x384xf32> to vector<8x128xf32>
    %233 = vector.extract_strided_slice %231 {offsets = [0, 128], sizes = [8, 256], strides = [1, 1]} : vector<8x384xf32> to vector<8x256xf32>
    %234 = arith.addf %5, %233 : vector<8x256xf32>
    %235 = math.tanh %234 : vector<8x256xf32>
    %236 = arith.truncf %235 : vector<8x256xf32> to vector<8x256xbf16>
    %c0_121 = arith.constant 0 : index
    %c0_122 = arith.constant 0 : index
    %237 = vector.load %arg4[%c0_121, %c0_122] : memref<256x8xbf16, #tpu.memory_space<vmem>>, vector<256x8xbf16>
    %cst_123 = arith.constant dense<0.000000e+00> : vector<8x8xf32>
    %238 = tpu.matmul %236, %237, %cst_123 {dimension_numbers = #tpu.dot_dimension_numbers<[1], [0], [0], [1], [0, 0, 1, 1], [], []>} : vector<8x256xbf16>, vector<256x8xbf16>, vector<8x8xf32> -> vector<8x8xf32>
    %239 = math.exp %238 : vector<8x8xf32>
    %cst_124 = arith.constant dense<0.000000e+00> : vector<8xf32>
    %240 = vector.multi_reduction <add>, %239, %cst_124 [1] : vector<8x8xf32> to vector<8xf32>
    %241 = vector.shape_cast %240 : vector<8xf32> to vector<8x1xf32>
    %242 = tpu.reciprocal %241 {approx = true} : vector<8x1xf32> -> vector<8x1xf32>
    %243 = vector.broadcast %242 : vector<8x1xf32> to vector<8x8xf32>
    %244 = arith.mulf %239, %243 : vector<8x8xf32>
    %245 = vector.extract_strided_slice %0 {offsets = [0, 40], sizes = [8, 8], strides = [1, 1]} : vector<8x64xf32> to vector<8x8xf32>
    %246 = arith.mulf %244, %245 : vector<8x8xf32>
    %c0_125 = arith.constant 0 : index
    %c0_126 = arith.constant 0 : index
    %247 = vector.load %arg6[%c0_125, %c0_126] : memref<8x128xf32, #tpu.memory_space<vmem>>, vector<8x128xf32>
    %cst_127 = arith.constant dense<0.000000e+00> : vector<8x128xf32>
    %248 = tpu.matmul %246, %247, %cst_127 {dimension_numbers = #tpu.dot_dimension_numbers<[1], [0], [0], [1], [0, 0, 1, 1], [], []>} : vector<8x8xf32>, vector<8x128xf32>, vector<8x128xf32> -> vector<8x128xf32>
    %249 = arith.addf %248, %232 : vector<8x128xf32>
    %c0_128 = arith.constant 0 : index
    %c0_129 = arith.constant 0 : index
    %250 = vector.load %arg7[%c0_128, %c0_129] : memref<1x128xf32, #tpu.memory_space<vmem>>, vector<1x128xf32>
    %251 = vector.broadcast %250 : vector<1x128xf32> to vector<8x128xf32>
    %252 = arith.addf %249, %251 : vector<8x128xf32>
    %253 = arith.negf %252 : vector<8x128xf32>
    %254 = math.exp %253 : vector<8x128xf32>
    %cst_130 = arith.constant 1.000000e+00 : f32
    %255 = vector.broadcast %cst_130 : f32 to vector<8x128xf32>
    %256 = arith.addf %255, %254 : vector<8x128xf32>
    %257 = arith.divf %255, %256 : vector<8x128xf32>
    %258 = vector.extract_strided_slice %257 {offsets = [0, 0], sizes = [8, 32], strides = [1, 1]} : vector<8x128xf32> to vector<8x32xf32>
    %259 = vector.extract_strided_slice %257 {offsets = [0, 32], sizes = [8, 32], strides = [1, 1]} : vector<8x128xf32> to vector<8x32xf32>
    %260 = vector.extract_strided_slice %257 {offsets = [0, 96], sizes = [8, 32], strides = [1, 1]} : vector<8x128xf32> to vector<8x32xf32>
    %261 = vector.extract_strided_slice %252 {offsets = [0, 64], sizes = [8, 32], strides = [1, 1]} : vector<8x128xf32> to vector<8x32xf32>
    %262 = math.tanh %261 : vector<8x32xf32>
    %263 = arith.mulf %259, %229 : vector<8x32xf32>
    %264 = arith.mulf %258, %262 : vector<8x32xf32>
    %265 = arith.addf %263, %264 : vector<8x32xf32>
    %266 = math.tanh %265 : vector<8x32xf32>
    %267 = arith.mulf %260, %266 : vector<8x32xf32>
    %c0_131 = arith.constant 0 : index
    %c0_132 = arith.constant 0 : index
    %268 = vector.load %arg10[%c0_131, %c0_132] : memref<8x64xf32, #tpu.memory_space<vmem>>, vector<8x32xf32>
    tpu.vector_store %arg10[%c0_131, %c0_132], %267 {strides = array<i32>} : memref<8x64xf32, #tpu.memory_space<vmem>>, vector<8x32xf32>,
    %c0_133 = arith.constant 0 : index
    %c32_134 = arith.constant 32 : index
    %269 = vector.load %arg10[%c0_133, %c32_134] : memref<8x64xf32, #tpu.memory_space<vmem>>, vector<8x32xf32>
    tpu.vector_store %arg10[%c0_133, %c32_134], %265 {strides = array<i32>} : memref<8x64xf32, #tpu.memory_space<vmem>>, vector<8x32xf32>,
    %c0_135 = arith.constant 0 : index
    %c40 = arith.constant 40 : index
    %270 = vector.load %arg8[%c0_135, %c40] : memref<8x64xf32, #tpu.memory_space<vmem>>, vector<8x8xf32>
    tpu.vector_store %arg8[%c0_135, %c40], %246 {strides = array<i32>} : memref<8x64xf32, #tpu.memory_space<vmem>>, vector<8x8xf32>,
    %c0_136 = arith.constant 0 : index
    %c160 = arith.constant 160 : index
    %271 = vector.load %arg9[%c0_136, %c160] : memref<8x256xf32, #tpu.memory_space<vmem>>, vector<8x32xf32>
    tpu.vector_store %arg9[%c0_136, %c160], %267 {strides = array<i32>} : memref<8x256xf32, #tpu.memory_space<vmem>>, vector<8x32xf32>,
    %c0_137 = arith.constant 0 : index
    %c0_138 = arith.constant 0 : index
    %272 = vector.load %arg10[%c0_137, %c0_138] : memref<8x64xf32, #tpu.memory_space<vmem>>, vector<8x64xf32>
    %273 = vector.extract_strided_slice %272 {offsets = [0, 32], sizes = [8, 32], strides = [1, 1]} : vector<8x64xf32> to vector<8x32xf32>
    %c0_139 = arith.constant 0 : index
    %c0_140 = arith.constant 0 : index
    %274 = vector.load %arg5[%c0_139, %c0_140] : memref<64x384xf32, #tpu.memory_space<vmem>>, vector<64x384xf32>
    %cst_141 = arith.constant dense<0.000000e+00> : vector<8x384xf32>
    %275 = tpu.matmul %272, %274, %cst_141 {dimension_numbers = #tpu.dot_dimension_numbers<[1], [0], [0], [1], [0, 0, 1, 1], [], []>} : vector<8x64xf32>, vector<64x384xf32>, vector<8x384xf32> -> vector<8x384xf32>
    %276 = vector.extract_strided_slice %275 {offsets = [0, 0], sizes = [8, 128], strides = [1, 1]} : vector<8x384xf32> to vector<8x128xf32>
    %277 = vector.extract_strided_slice %275 {offsets = [0, 128], sizes = [8, 256], strides = [1, 1]} : vector<8x384xf32> to vector<8x256xf32>
    %278 = arith.addf %5, %277 : vector<8x256xf32>
    %279 = math.tanh %278 : vector<8x256xf32>
    %280 = arith.truncf %279 : vector<8x256xf32> to vector<8x256xbf16>
    %c0_142 = arith.constant 0 : index
    %c0_143 = arith.constant 0 : index
    %281 = vector.load %arg4[%c0_142, %c0_143] : memref<256x8xbf16, #tpu.memory_space<vmem>>, vector<256x8xbf16>
    %cst_144 = arith.constant dense<0.000000e+00> : vector<8x8xf32>
    %282 = tpu.matmul %280, %281, %cst_144 {dimension_numbers = #tpu.dot_dimension_numbers<[1], [0], [0], [1], [0, 0, 1, 1], [], []>} : vector<8x256xbf16>, vector<256x8xbf16>, vector<8x8xf32> -> vector<8x8xf32>
    %283 = math.exp %282 : vector<8x8xf32>
    %cst_145 = arith.constant dense<0.000000e+00> : vector<8xf32>
    %284 = vector.multi_reduction <add>, %283, %cst_145 [1] : vector<8x8xf32> to vector<8xf32>
    %285 = vector.shape_cast %284 : vector<8xf32> to vector<8x1xf32>
    %286 = tpu.reciprocal %285 {approx = true} : vector<8x1xf32> -> vector<8x1xf32>
    %287 = vector.broadcast %286 : vector<8x1xf32> to vector<8x8xf32>
    %288 = arith.mulf %283, %287 : vector<8x8xf32>
    %289 = vector.extract_strided_slice %0 {offsets = [0, 48], sizes = [8, 8], strides = [1, 1]} : vector<8x64xf32> to vector<8x8xf32>
    %290 = arith.mulf %288, %289 : vector<8x8xf32>
    %c0_146 = arith.constant 0 : index
    %c0_147 = arith.constant 0 : index
    %291 = vector.load %arg6[%c0_146, %c0_147] : memref<8x128xf32, #tpu.memory_space<vmem>>, vector<8x128xf32>
    %cst_148 = arith.constant dense<0.000000e+00> : vector<8x128xf32>
    %292 = tpu.matmul %290, %291, %cst_148 {dimension_numbers = #tpu.dot_dimension_numbers<[1], [0], [0], [1], [0, 0, 1, 1], [], []>} : vector<8x8xf32>, vector<8x128xf32>, vector<8x128xf32> -> vector<8x128xf32>
    %293 = arith.addf %292, %276 : vector<8x128xf32>
    %c0_149 = arith.constant 0 : index
    %c0_150 = arith.constant 0 : index
    %294 = vector.load %arg7[%c0_149, %c0_150] : memref<1x128xf32, #tpu.memory_space<vmem>>, vector<1x128xf32>
    %295 = vector.broadcast %294 : vector<1x128xf32> to vector<8x128xf32>
    %296 = arith.addf %293, %295 : vector<8x128xf32>
    %297 = arith.negf %296 : vector<8x128xf32>
    %298 = math.exp %297 : vector<8x128xf32>
    %cst_151 = arith.constant 1.000000e+00 : f32
    %299 = vector.broadcast %cst_151 : f32 to vector<8x128xf32>
    %300 = arith.addf %299, %298 : vector<8x128xf32>
    %301 = arith.divf %299, %300 : vector<8x128xf32>
    %302 = vector.extract_strided_slice %301 {offsets = [0, 0], sizes = [8, 32], strides = [1, 1]} : vector<8x128xf32> to vector<8x32xf32>
    %303 = vector.extract_strided_slice %301 {offsets = [0, 32], sizes = [8, 32], strides = [1, 1]} : vector<8x128xf32> to vector<8x32xf32>
    %304 = vector.extract_strided_slice %301 {offsets = [0, 96], sizes = [8, 32], strides = [1, 1]} : vector<8x128xf32> to vector<8x32xf32>
    %305 = vector.extract_strided_slice %296 {offsets = [0, 64], sizes = [8, 32], strides = [1, 1]} : vector<8x128xf32> to vector<8x32xf32>
    %306 = math.tanh %305 : vector<8x32xf32>
    %307 = arith.mulf %303, %273 : vector<8x32xf32>
    %308 = arith.mulf %302, %306 : vector<8x32xf32>
    %309 = arith.addf %307, %308 : vector<8x32xf32>
    %310 = math.tanh %309 : vector<8x32xf32>
    %311 = arith.mulf %304, %310 : vector<8x32xf32>
    %c0_152 = arith.constant 0 : index
    %c0_153 = arith.constant 0 : index
    %312 = vector.load %arg10[%c0_152, %c0_153] : memref<8x64xf32, #tpu.memory_space<vmem>>, vector<8x32xf32>
    tpu.vector_store %arg10[%c0_152, %c0_153], %311 {strides = array<i32>} : memref<8x64xf32, #tpu.memory_space<vmem>>, vector<8x32xf32>,
    %c0_154 = arith.constant 0 : index
    %c32_155 = arith.constant 32 : index
    %313 = vector.load %arg10[%c0_154, %c32_155] : memref<8x64xf32, #tpu.memory_space<vmem>>, vector<8x32xf32>
    tpu.vector_store %arg10[%c0_154, %c32_155], %309 {strides = array<i32>} : memref<8x64xf32, #tpu.memory_space<vmem>>, vector<8x32xf32>,
    %c0_156 = arith.constant 0 : index
    %c48 = arith.constant 48 : index
    %314 = vector.load %arg8[%c0_156, %c48] : memref<8x64xf32, #tpu.memory_space<vmem>>, vector<8x8xf32>
    tpu.vector_store %arg8[%c0_156, %c48], %290 {strides = array<i32>} : memref<8x64xf32, #tpu.memory_space<vmem>>, vector<8x8xf32>,
    %c0_157 = arith.constant 0 : index
    %c192 = arith.constant 192 : index
    %315 = vector.load %arg9[%c0_157, %c192] : memref<8x256xf32, #tpu.memory_space<vmem>>, vector<8x32xf32>
    tpu.vector_store %arg9[%c0_157, %c192], %311 {strides = array<i32>} : memref<8x256xf32, #tpu.memory_space<vmem>>, vector<8x32xf32>,
    %c0_158 = arith.constant 0 : index
    %c0_159 = arith.constant 0 : index
    %316 = vector.load %arg10[%c0_158, %c0_159] : memref<8x64xf32, #tpu.memory_space<vmem>>, vector<8x64xf32>
    %317 = vector.extract_strided_slice %316 {offsets = [0, 32], sizes = [8, 32], strides = [1, 1]} : vector<8x64xf32> to vector<8x32xf32>
    %c0_160 = arith.constant 0 : index
    %c0_161 = arith.constant 0 : index
    %318 = vector.load %arg5[%c0_160, %c0_161] : memref<64x384xf32, #tpu.memory_space<vmem>>, vector<64x384xf32>
    %cst_162 = arith.constant dense<0.000000e+00> : vector<8x384xf32>
    %319 = tpu.matmul %316, %318, %cst_162 {dimension_numbers = #tpu.dot_dimension_numbers<[1], [0], [0], [1], [0, 0, 1, 1], [], []>} : vector<8x64xf32>, vector<64x384xf32>, vector<8x384xf32> -> vector<8x384xf32>
    %320 = vector.extract_strided_slice %319 {offsets = [0, 0], sizes = [8, 128], strides = [1, 1]} : vector<8x384xf32> to vector<8x128xf32>
    %321 = vector.extract_strided_slice %319 {offsets = [0, 128], sizes = [8, 256], strides = [1, 1]} : vector<8x384xf32> to vector<8x256xf32>
    %322 = arith.addf %5, %321 : vector<8x256xf32>
    %323 = math.tanh %322 : vector<8x256xf32>
    %324 = arith.truncf %323 : vector<8x256xf32> to vector<8x256xbf16>
    %c0_163 = arith.constant 0 : index
    %c0_164 = arith.constant 0 : index
    %325 = vector.load %arg4[%c0_163, %c0_164] : memref<256x8xbf16, #tpu.memory_space<vmem>>, vector<256x8xbf16>
    %cst_165 = arith.constant dense<0.000000e+00> : vector<8x8xf32>
    %326 = tpu.matmul %324, %325, %cst_165 {dimension_numbers = #tpu.dot_dimension_numbers<[1], [0], [0], [1], [0, 0, 1, 1], [], []>} : vector<8x256xbf16>, vector<256x8xbf16>, vector<8x8xf32> -> vector<8x8xf32>
    %327 = math.exp %326 : vector<8x8xf32>
    %cst_166 = arith.constant dense<0.000000e+00> : vector<8xf32>
    %328 = vector.multi_reduction <add>, %327, %cst_166 [1] : vector<8x8xf32> to vector<8xf32>
    %329 = vector.shape_cast %328 : vector<8xf32> to vector<8x1xf32>
    %330 = tpu.reciprocal %329 {approx = true} : vector<8x1xf32> -> vector<8x1xf32>
    %331 = vector.broadcast %330 : vector<8x1xf32> to vector<8x8xf32>
    %332 = arith.mulf %327, %331 : vector<8x8xf32>
    %333 = vector.extract_strided_slice %0 {offsets = [0, 56], sizes = [8, 8], strides = [1, 1]} : vector<8x64xf32> to vector<8x8xf32>
    %334 = arith.mulf %332, %333 : vector<8x8xf32>
    %c0_167 = arith.constant 0 : index
    %c0_168 = arith.constant 0 : index
    %335 = vector.load %arg6[%c0_167, %c0_168] : memref<8x128xf32, #tpu.memory_space<vmem>>, vector<8x128xf32>
    %cst_169 = arith.constant dense<0.000000e+00> : vector<8x128xf32>
    %336 = tpu.matmul %334, %335, %cst_169 {dimension_numbers = #tpu.dot_dimension_numbers<[1], [0], [0], [1], [0, 0, 1, 1], [], []>} : vector<8x8xf32>, vector<8x128xf32>, vector<8x128xf32> -> vector<8x128xf32>
    %337 = arith.addf %336, %320 : vector<8x128xf32>
    %c0_170 = arith.constant 0 : index
    %c0_171 = arith.constant 0 : index
    %338 = vector.load %arg7[%c0_170, %c0_171] : memref<1x128xf32, #tpu.memory_space<vmem>>, vector<1x128xf32>
    %339 = vector.broadcast %338 : vector<1x128xf32> to vector<8x128xf32>
    %340 = arith.addf %337, %339 : vector<8x128xf32>
    %341 = arith.negf %340 : vector<8x128xf32>
    %342 = math.exp %341 : vector<8x128xf32>
    %cst_172 = arith.constant 1.000000e+00 : f32
    %343 = vector.broadcast %cst_172 : f32 to vector<8x128xf32>
    %344 = arith.addf %343, %342 : vector<8x128xf32>
    %345 = arith.divf %343, %344 : vector<8x128xf32>
    %346 = vector.extract_strided_slice %345 {offsets = [0, 0], sizes = [8, 32], strides = [1, 1]} : vector<8x128xf32> to vector<8x32xf32>
    %347 = vector.extract_strided_slice %345 {offsets = [0, 32], sizes = [8, 32], strides = [1, 1]} : vector<8x128xf32> to vector<8x32xf32>
    %348 = vector.extract_strided_slice %345 {offsets = [0, 96], sizes = [8, 32], strides = [1, 1]} : vector<8x128xf32> to vector<8x32xf32>
    %349 = vector.extract_strided_slice %340 {offsets = [0, 64], sizes = [8, 32], strides = [1, 1]} : vector<8x128xf32> to vector<8x32xf32>
    %350 = math.tanh %349 : vector<8x32xf32>
    %351 = arith.mulf %347, %317 : vector<8x32xf32>
    %352 = arith.mulf %346, %350 : vector<8x32xf32>
    %353 = arith.addf %351, %352 : vector<8x32xf32>
    %354 = math.tanh %353 : vector<8x32xf32>
    %355 = arith.mulf %348, %354 : vector<8x32xf32>
    %c0_173 = arith.constant 0 : index
    %c0_174 = arith.constant 0 : index
    %356 = vector.load %arg10[%c0_173, %c0_174] : memref<8x64xf32, #tpu.memory_space<vmem>>, vector<8x32xf32>
    tpu.vector_store %arg10[%c0_173, %c0_174], %355 {strides = array<i32>} : memref<8x64xf32, #tpu.memory_space<vmem>>, vector<8x32xf32>,
    %c0_175 = arith.constant 0 : index
    %c32_176 = arith.constant 32 : index
    %357 = vector.load %arg10[%c0_175, %c32_176] : memref<8x64xf32, #tpu.memory_space<vmem>>, vector<8x32xf32>
    tpu.vector_store %arg10[%c0_175, %c32_176], %353 {strides = array<i32>} : memref<8x64xf32, #tpu.memory_space<vmem>>, vector<8x32xf32>,
    %c0_177 = arith.constant 0 : index
    %c56 = arith.constant 56 : index
    %358 = vector.load %arg8[%c0_177, %c56] : memref<8x64xf32, #tpu.memory_space<vmem>>, vector<8x8xf32>
    tpu.vector_store %arg8[%c0_177, %c56], %334 {strides = array<i32>} : memref<8x64xf32, #tpu.memory_space<vmem>>, vector<8x8xf32>,
    %c0_178 = arith.constant 0 : index
    %c224 = arith.constant 224 : index
    %359 = vector.load %arg9[%c0_178, %c224] : memref<8x256xf32, #tpu.memory_space<vmem>>, vector<8x32xf32>
    tpu.vector_store %arg9[%c0_178, %c224], %355 {strides = array<i32>} : memref<8x256xf32, #tpu.memory_space<vmem>>, vector<8x32xf32>,
    return
  }
  func.func @transform_0(%arg0: i32) -> (i32, i32) {
    %c0_i32 = arith.constant 0 : i32
    %c0_i32_0 = arith.constant 0 : i32
    return %arg0, %c0_i32 : i32, i32
  }
  func.func @transform_1(%arg0: i32) -> (i32, i32) {
    %c0_i32 = arith.constant 0 : i32
    %c0_i32_0 = arith.constant 0 : i32
    %c0_i32_1 = arith.constant 0 : i32
    return %c0_i32, %c0_i32_0 : i32, i32
  }
  func.func @transform_2(%arg0: i32) -> (i32, i32) {
    %c0_i32 = arith.constant 0 : i32
    %c0_i32_0 = arith.constant 0 : i32
    %c0_i32_1 = arith.constant 0 : i32
    return %c0_i32, %c0_i32_0 : i32, i32
  }
  func.func @transform_3(%arg0: i32) -> (i32, i32) {
    %c0_i32 = arith.constant 0 : i32
    %c0_i32_0 = arith.constant 0 : i32
    %c0_i32_1 = arith.constant 0 : i32
    return %c0_i32, %c0_i32_0 : i32, i32
  }
  func.func @transform_4(%arg0: i32) -> (i32, i32) {
    %c0_i32 = arith.constant 0 : i32
    %c0_i32_0 = arith.constant 0 : i32
    %c0_i32_1 = arith.constant 0 : i32
    return %c0_i32, %c0_i32_0 : i32, i32
  }
  func.func @transform_5(%arg0: i32) -> (i32, i32) {
    %c0_i32 = arith.constant 0 : i32
    %c0_i32_0 = arith.constant 0 : i32
    %c0_i32_1 = arith.constant 0 : i32
    return %c0_i32, %c0_i32_0 : i32, i32
  }
  func.func @transform_6(%arg0: i32) -> (i32, i32) {
    %c0_i32 = arith.constant 0 : i32
    %c0_i32_0 = arith.constant 0 : i32
    %c0_i32_1 = arith.constant 0 : i32
    return %c0_i32, %c0_i32_0 : i32, i32
  }
  func.func @transform_7(%arg0: i32) -> (i32, i32) {
    %c0_i32 = arith.constant 0 : i32
    %c0_i32_0 = arith.constant 0 : i32
    return %arg0, %c0_i32 : i32, i32
  }
  func.func @transform_8(%arg0: i32) -> (i32, i32) {
    %c0_i32 = arith.constant 0 : i32
    %c0_i32_0 = arith.constant 0 : i32
    return %arg0, %c0_i32 : i32, i32
  }
}

</mosaic_0001>

<bundles_post_ra>
// kernel: encoder_darnn_forward.1
= control target key start
LH: loop header
LB: loop body
LE: loop exit
PB: predicated region body
PF: predicated region fallthrough
CT: control target
= control target key end

     0   :  { %s4099_s27 = smov 0   ;;  %s5397_s0 = inlined_call_operand.vmem [shape: f32[16,64], index: 0, kind: input, shape index: {}]   ;;  %s5398_s1 = inlined_call_operand.vmem [shape: f32[64,256], index: 1, kind: input, shape index: {}]   ;;  %s5399_s2 = inlined_call_operand.vmem [shape: f32[1,256], index: 2, kind: input, shape index: {}]   ;;  %s5400_s3 = inlined_call_operand.vmem [shape: bf16[256,8], index: 3, kind: input, shape index: {}]   ;;  %s5401_s4 = inlined_call_operand.vmem [shape: f32[64,384], index: 4, kind: input, shape index: {}]   ;;  %s5402_s5 = inlined_call_operand.vmem [shape: f32[8,128], index: 5, kind: input, shape index: {}]   ;;  %s5403_s6 = inlined_call_operand.vmem [shape: f32[1,128], index: 6, kind: input, shape index: {}]   ;;  %s5404_s7 = inlined_call_operand.vmem [shape: f32[16,64], index: 7, kind: output, shape index: {0}]   ;;  %s5405_s8 = inlined_call_operand.vmem [shape: f32[16,256], index: 8, kind: output, shape index: {1}]  }
   0x1 LB: > { %s3174_s28 = sadd.s32 4294967295, %s4036_s27   ;;  %p3178_p0 = scmp.ge.s32.totalorder %s4036_s27, 1  ;;  %s4036_s27 = sphi %s4099_s27, %s19_s27  }
   0x2   : > { %p264_p1 = scmp.lt.s32.totalorder %s4036_s27, 3 }
   0x4   : > { %p265_p2 = pnand %p3178_p0, %p264_p1 }
   0x5   : > { %p301_p3 = scmp.lt.s32.totalorder (!%p265_p2), %s3174_s28, 1  ;;  %s4039_s20 = smov (!%p265_p2), 64  }
   0x6   : > { %268 = sbr.rel (%p265_p2) target bundleno = 8234 (0x202a), region = 48  ;;  %s4040_s21 = smov (!%p265_p2), 32  }
   0x7   : > { %s4041_s25 = smov (!%p265_p2), 120   ;;  %s4042_s9 = smov (!%p265_p2), 112  }
   0x8   : > { %s4043_s12 = smov (!%p265_p2), 104   ;;  %s4046_s14 = smov (!%p265_p2), 80  }
   0x9   : > { %s4050_s10 = smov (!%p265_p2), 48   ;;  %s4051_s11 = smov (!%p265_p2), 8  }
   0xa   : > { %s4053_s13 = smov (!%p265_p2), 40  }
   0xb   : > { %v329_v0 = vld [vmem:[%s5398_s1 + $0x70] sm:$0xff]  ;;  %v327_v2 = vld [vmem:[%s5398_s1 + $0x60] sm:$0xff]  ;;  %vm337_vm0 = vcmask 523264   ;;  %v4122_v3 = vld [vmem:[%s5401_s4 + $0x98] sm:$0xff]  ;;  %v4038_v4 = vmov 0.0   ;;  %s5407_s28 = smov (!%p301_p3, %s3174_s28), 1 }
   0xc   : > { %v4113_v1 = vld [vmem:[%s5401_s4 + $0xb0] sm:$0xff]  ;;  %349 = vmatpush.msra.mxu0 %v329_v0  ;;  %381 = vst.msk [vmem:[#allocation2] sm:$0xff] %vm337_vm0, %v4038_v4  ;;  %v4131_v6 = vld [vmem:[%s5401_s4 + $0x80] sm:$0xff]  ;;  %v4140_v8 = vld [vmem:[%s5401_s4 + $0x68] sm:$0xff]  ;;  %s3179_s17 = sshll.u32 %s5407_s28, 3  ;;  %vm632_vm1 = vcmask 64512  }
   0xd   : > { %438 = vmatpush.msra.mxu3 %v4113_v1  ;;  %v325_v5 = vld [vmem:[%s5398_s1 + $0x50] sm:$0xff]  ;;  %v323_v7 = vld [vmem:[%s5398_s1 + $0x40] sm:$0xff]  ;;  %v330_v9 = vld [vmem:[%s5398_s1 + $0x78] sm:$0xff]  ;;  %s4190_s26 = scalar_lea.vmem %s5397_s0, %s3179_s17  ;;  %s4419_s18 = scalar_lea.vmem %s5404_s7, %s3179_s17  ;;  %vm709_vm6 = vcmask 261120   ;;  %vm711_vm7 = vcmask 523520  }
   0xe   : > { %350 = vmatpush.msra.mxu0 %v327_v2  ;;  %v328_v10 = vld [vmem:[%s5398_s1 + $0x68] sm:$0xff]  ;;  %v321_v11 = vld [vmem:[%s5398_s1 + $0x30] sm:$0xff]  ;;  %369 = vmatpush.msra.mxu1 %v330_v9  ;;  %v326_v13 = vld [vmem:[%s5398_s1 + $0x58] sm:$0xff]  ;;  %s3739_s15 = sshll.u32 %s5407_s28, 4  ;;  %s4044_s17 = smov 96  }
   0xf   : > { %439 = vmatpush.msra.mxu3 %v4122_v3  ;;  %v4157_v12 = vld [vmem:[%s5401_s4 + $0x50] sm:$0xff]  ;;  %v319_v14 = vld [vmem:[%s5398_s1 + $0x20] sm:$0xff]  ;;  %v4169_v15 = vld [vmem:[%s5401_s4 + $0x38] sm:$0xff]  ;;  %s4463_s19 = scalar_lea.vmem %s5405_s8, %s3739_s15 }
  0x10   : > { %351 = vmatpush.msra.mxu0 %v325_v5  ;;  %370 = vmatpush.msra.mxu1 %v328_v10  ;;  %v324_v16 = vld [vmem:[%s5398_s1 + $0x48] sm:$0xff]  ;;  %v317_v17 = vld [vmem:[%s5398_s1 + $0x10] sm:$0xff]  ;;  %v4182_v18 = vld [vmem:[%s5401_s4 + $0x20] sm:$0xff] }
  0x11   : > { %440 = vmatpush.msra.mxu3 %v4131_v6  ;;  %v322_v19 = vld [vmem:[%s5398_s1 + $0x38] sm:$0xff]  ;;  %v4198_v20 = vld [vmem:[%s5401_s4 + $0xa8] sm:$0xff]  ;;  %v4203_v21 = vld [vmem:[%s5401_s4 + $0x90] sm:$0xff] }
  0x12   : > { %352 = vmatpush.msra.mxu0 %v323_v7  ;;  %371 = vmatpush.msra.mxu1 %v326_v13  ;;  %v315_v22 = vld [vmem:[%s5398_s1] sm:$0xff]  ;;  %v4211_v23 = vld [vmem:[%s5401_s4 + $0x8] sm:$0xff]  ;;  %v4220_v25 = vld [vmem:[%s5401_s4 + $0xb8] sm:$0xff] }
  0x13   : > { %441 = vmatpush.msra.mxu3 %v4140_v8  ;;  %418 = vmatpush.msra.mxu2 %v4198_v20  ;;  %v4215_v24 = vld [vmem:[#allocation2] sm:$0xff]  ;;  %v320_v27 = vld [vmem:[%s5398_s1 + $0x28] sm:$0xff]  ;;  %v4243_v30 = vld [vmem:[%s5401_s4 + $0x78] sm:$0xff] }
  0x14   : > { %353 = vmatpush.msra.mxu0 %v321_v11  ;;  %372 = vmatpush.msra.mxu1 %v324_v16  ;;  %v4223_v26 = vld [vmem:[%s4190_s26] sm:$0xff]  ;;  %v4238_v29 = vld [vmem:[%s5401_s4 + $0x88] sm:$0xff]  ;;  %v318_v31 = vld [vmem:[%s5398_s1 + $0x18] sm:$0xff] }
  0x15   : > { %442 = vmatpush.msra.mxu3 %v4157_v12  ;;  %419 = vmatpush.msra.mxu2 %v4203_v21  ;;  %v4233_v28 = vld [vmem:[%s5401_s4 + $0xa0] sm:$0xff]  ;;  %v316_v32 = vld [vmem:[%s5398_s1 + $0x8] sm:$0xff]  ;;  %v4259_v33 = vld [vmem:[%s5401_s4 + $0x70] sm:$0xff] }
  0x16   : > { %354 = vmatpush.msra.mxu0 %v319_v14  ;;  %373 = vmatpush.msra.mxu1 %v322_v19  ;;  %v4264_v34 = vld [vmem:[%s5401_s4 + $0x60] sm:$0xff]  ;;  %v3747_v35 = vld [vmem:[%s5400_s3 + $0x38] sm:$0xff]  ;;  %v4276_v36 = vld [vmem:[%s5401_s4 + $0x48] sm:$0xff] }
  0x17   : > { %443 = vmatpush.msra.mxu3 %v4169_v15  ;;  %420 = vmatpush.msra.mxu2 %v4243_v30  ;;  %v4281_v37 = vld [vmem:[%s5401_s4 + $0x58] sm:$0xff]  ;;  %v4289_v38 = vld [vmem:[%s5401_s4 + $0x30] sm:$0xff]  ;;  %v4294_v39 = vld [vmem:[%s5401_s4 + $0x40] sm:$0xff] }
  0x18   : > { %355 = vmatpush.msra.mxu0 %v317_v17  ;;  %374 = vmatpush.msra.mxu1 %v320_v27  ;;  %v3746_v40 = vld [vmem:[%s5400_s3 + $0x30] sm:$0xff]  ;;  %v4304_v41 = vld [vmem:[%s5401_s4 + $0x18] sm:$0xff]  ;;  %v4309_v42 = vld [vmem:[%s5401_s4 + $0x28] sm:$0xff] }
  0x19   : > { %444 = vmatpush.msra.mxu3 %v4182_v18  ;;  %421 = vmatpush.msra.mxu2 %v4264_v34  ;;  %v4316_v43 = vld [vmem:[%s5401_s4] sm:$0xff]  ;;  %v3755_v44 = vld [vmem:[%s5400_s3 + $0x78] sm:$0xff]  ;;  %v4324_v45 = vld [vmem:[%s5401_s4 + $0x10] sm:$0xff] }
  0x1a   : > { %356 = vmatpush.msra.mxu0 %v315_v22  ;;  %375 = vmatpush.msra.mxu1 %v318_v31  ;;  %v3745_v46 = vld [vmem:[%s5400_s3 + $0x28] sm:$0xff]  ;;  %v3754_v47 = vld [vmem:[%s5400_s3 + $0x70] sm:$0xff]  ;;  %v3744_v48 = vld [vmem:[%s5400_s3 + $0x20] sm:$0xff] }
  0x1b   : > { %445 = vmatpush.msra.mxu3 %v4211_v23  ;;  %3183 = vmatmul.msk.f32.vlgmr.msra.gmra.mxu0 %vm337_vm0, %v4223_v26  ;;  %v3743_v49 = vld [vmem:[%s5400_s3 + $0x18] sm:$0xff]  ;;  %v3753_v50 = vld [vmem:[%s5400_s3 + $0x68] sm:$0xff]  ;;  %v3742_v51 = vld [vmem:[%s5400_s3 + $0x10] sm:$0xff] }
  0x1c   : > { %3186 = vmatmul.msk.f32.vlgmr.msra.gmra.mxu3 %vm337_vm0, %v4215_v24  ;;  %458 = vmatpush.msrb.mxu0 %v4220_v25  ;;  %v3752_v52 = vld [vmem:[%s5400_s3 + $0x60] sm:$0xff]  ;;  %v3741_v53 = vld [vmem:[%s5400_s3 + $0x8] sm:$0xff]  ;;  %v3751_v54 = vld [vmem:[%s5400_s3 + $0x58] sm:$0xff] }
  0x1d   : > { %376 = vmatpush.msra.mxu1 %v316_v32  ;;  %422 = vmatpush.msra.mxu2 %v4276_v36  ;;  %v3740_v55 = vld [vmem:[%s5400_s3] sm:$0xff]  ;;  %v3750_v56 = vld [vmem:[%s5400_s3 + $0x50] sm:$0xff]  ;;  %v3749_v57 = vld [vmem:[%s5400_s3 + $0x48] sm:$0xff] }
  0x1e   : > { %459 = vmatpush.msrb.mxu0 %v4233_v28  ;;  %3184 = vmatmul.msk.f32.vlgmr.msra.gmra.mxu1 %vm337_vm0, %v4223_v26  ;;  %v3748_v58 = vld [vmem:[%s5400_s3 + $0x40] sm:$0xff] }
  0x1f   : > { %604 = vmatpush.bf16.msrb.mxu1 %v3747_v35  ;;  %423 = vmatpush.msra.mxu2 %v4289_v38  ;;  %v331_v59 = vld [vmem:[%s5399_s2] sm:$0x3] }
  0x20   : > { %460 = vmatpush.msrb.mxu0 %v4238_v29  ;;  %v333_v60 = vperm.slane %v331_v59, 0  ;;  %v4402_v19 = vld [vmem:[%s5402_s5] sm:$0xff] }
  0x21   : > { %424 = vmatpush.msra.mxu2 %v4304_v41  ;;  %658 = vmatpush.msrb.mxu3 %v4402_v19  ;;  %v3892_v32 = vld [vmem:[%s5403_s6] ss:$0 sm:$0xff] }
  0x22   : > { %461 = vmatpush.msrb.mxu0 %v4259_v33 }
  0x23   : > { %605 = vmatpush.bf16.msrb.mxu1 %v3746_v40  ;;  %425 = vmatpush.msra.mxu2 %v4316_v43 }
  0x24   : > { %462 = vmatpush.msrb.mxu0 %v4281_v37  ;;  %3185 = vmatmul.msk.f32.vlgmr.msra.gmra.mxu2 %vm337_vm0, %v4215_v24 }
  0x25   : > { %617 = vmatpush.bf16.msrb.mxu2 %v3755_v44  ;;  %751 = vmatpush.msra.mxu3 %v4198_v20 }
  0x26   : > { %463 = vmatpush.msrb.mxu0 %v4294_v39 }
  0x27   : > { %606 = vmatpush.bf16.msrb.mxu1 %v3745_v46  ;;  %752 = vmatpush.msra.mxu3 %v4203_v21 }
  0x28   : > { %464 = vmatpush.msrb.mxu0 %v4309_v42 }
  0x29   : > { %618 = vmatpush.bf16.msrb.mxu2 %v3754_v47  ;;  %753 = vmatpush.msra.mxu3 %v4243_v30 }
  0x2a   : > { %465 = vmatpush.msrb.mxu0 %v4324_v45 }
  0x2b   : > { %3187 = vmatmul.msk.f32.vlgmr.msrb.gmra.mxu0 %vm337_vm0, %v4215_v24  ;;  %607 = vmatpush.bf16.msrb.mxu1 %v3744_v48 }
  0x2c   : > { %771 = vmatpush.msra.mxu0 %v4113_v1  ;;  %754 = vmatpush.msra.mxu3 %v4264_v34 }
  0x2d   : > { %619 = vmatpush.bf16.msrb.mxu2 %v3753_v50 }
  0x2e   : > { %772 = vmatpush.msra.mxu0 %v4122_v3  ;;  %755 = vmatpush.msra.mxu3 %v4276_v36 }
  0x2f   : > { %608 = vmatpush.bf16.msrb.mxu1 %v3743_v49 }
  0x30   : > { %773 = vmatpush.msra.mxu0 %v4131_v6  ;;  %756 = vmatpush.msra.mxu3 %v4289_v38 }
  0x31   : > { %620 = vmatpush.bf16.msrb.mxu2 %v3752_v52 }
  0x32   : > { %774 = vmatpush.msra.mxu0 %v4140_v8  ;;  %757 = vmatpush.msra.mxu3 %v4304_v41 }
  0x33   : > { %609 = vmatpush.bf16.msrb.mxu1 %v3742_v51 }
  0x34   : > { %775 = vmatpush.msra.mxu0 %v4157_v12  ;;  %758 = vmatpush.msra.mxu3 %v4316_v43 }
  0x35   : > { %621 = vmatpush.bf16.msrb.mxu2 %v3751_v54 }
  0x36   : > { %776 = vmatpush.msra.mxu0 %v4169_v15 }
  0x37   : > { %610 = vmatpush.bf16.msrb.mxu1 %v3741_v53 }
  0x38   : > { %777 = vmatpush.msra.mxu0 %v4182_v18 }
  0x39   : > { %622 = vmatpush.bf16.msrb.mxu2 %v3750_v56 }
  0x3a   : > { %778 = vmatpush.msra.mxu0 %v4211_v23 }
  0x3b   : > { %611 = vmatpush.bf16.msrb.mxu1 %v3740_v55 }
  0x3d   : > { %623 = vmatpush.bf16.msrb.mxu2 %v3749_v57 }
  0x41   : > { %624 = vmatpush.bf16.msrb.mxu2 %v3748_v58 }
  0x45   : > { %1111 = vmatpush.msra.mxu2 %v4113_v1  ;;  %v334_v1 = vperm.slane %v331_v59, 1 }
  0x47   : > { %1112 = vmatpush.msra.mxu2 %v4122_v3 }
  0x49   : > { %1113 = vmatpush.msra.mxu2 %v4131_v6 }
  0x4b   : > { %1114 = vmatpush.msra.mxu2 %v4140_v8 }
  0x4d   : > { %1115 = vmatpush.msra.mxu2 %v4157_v12 }
  0x4f   : > { %1116 = vmatpush.msra.mxu2 %v4169_v15 }
  0x51   : > { %1117 = vmatpush.msra.mxu2 %v4182_v18 }
  0x53   : > { %1118 = vmatpush.msra.mxu2 %v4211_v23 }
  0x98   : > { %v358_v61 = vpop.f32.mrf.mxu0 }
  0x99   : > { %v4389_v62 = vadd.f32 %v358_v61, %v333_v60 }
  0x9b   : > { %v378_v2 = vpop.f32.mrf.mxu1 }
  0x9c   : > { %v4395_v3 = vadd.f32 %v378_v2, %v334_v1 }
  0x9f   : > { %v447_v63 = vpop.f32.mrf.mxu3 }
  0xa0   : > { %v470_v0 = vadd.f32 %v447_v63, %v4389_v62 }
  0xa2   : > { %3900 = vtanh.f32 %v470_v0 }
  0xa7   : > { %v427_v11 = vpop.f32.mrf.mxu2 }
  0xa8   : > { %v3901_v4 = vpop.eup %3900  ;;  %v467_v5 = vpop.f32.mrf.mxu0 }
  0xa9   : > { %v474_v6 = vpack.c.bf16 %v3901_v4, %v3901_v4  ;;  %v471_v7 = vadd.f32 %v467_v5, %v4395_v3 }
  0xab   : > { %3902 = vtanh.f32 %v471_v7  ;;  %612 = vmatmul.bf16.vlgmr.msrb.gmra.mxu1 %v474_v6  ;;  %v3763_v6 = vld [vmem:[%s5400_s3 + $0x38] sm:$0xff] }
  0xac   : > { %v3771_v7 = vld [vmem:[%s5400_s3 + $0x78] sm:$0xff]  ;;  %937 = vmatpush.bf16.msrb.mxu0 %v3763_v6 }
  0xad   : > { %950 = vmatpush.bf16.msra.mxu1 %v3771_v7 }
  0xb1   : > { %v3903_v8 = vpop.eup %3902 }
  0xb2   : > { %v475_v9 = vpack.c.bf16 %v3903_v8, %v3903_v8  ;;  %v3770_v8 = vld [vmem:[%s5400_s3 + $0x70] sm:$0xff] }
  0xb3   : > { %951 = vmatpush.bf16.msra.mxu1 %v3770_v8 }
  0xb4   : > { %625 = vmatmul.bf16.vlgmr.msrb.gmra.mxu2 %v475_v9  ;;  %v3761_v9 = vld [vmem:[%s5400_s3 + $0x28] sm:$0xff] }
  0xb5   : > { %1333 = vmatpush.msrb.mxu2 %v4402_v19 }
 0x128   : > { %v613_v10 = vpop.f32.mrf.mxu1 }
 0x130   : > { %v615_v12 = vpop.f32.mrf.mxu1 }
 0x131   : > { %v3759_v12 = vld [vmem:[%s5400_s3 + $0x18] sm:$0xff] }
 0x137   : > { %v626_v13 = vpop.f32.mrf.mxu2 }
 0x138   : > { %v627_v14 = vadd.f32 %v626_v13, %v613_v10  ;;  %v3760_v10 = vld [vmem:[%s5400_s3 + $0x20] sm:$0xff] }
 0x13a   : > { %v630_v15 = vmul.f32 1.442695, %v627_v14  ;;  %v3758_v14 = vld [vmem:[%s5400_s3 + $0x10] sm:$0xff] }
 0x13c   : > { %3904 = vpow2.f32 %v630_v15 }
 0x13f   : > { %v628_v16 = vpop.f32.mrf.mxu2 }
 0x142   : > { %v3905_v17 = vpop.eup %3904 }
 0x143   : > { %v633_v18 = vsel %vm632_vm1, %v3905_v17, 0.0 }
 0x144   : > { %634 = vadd.xlane.f32.xlu0 %v633_v18 }
 0x1b7   : > { %v635_v22 = vpop.xlane.xlu0 %634 }
 0x1b8   : > { %3906 = vrcp.f32 %v635_v22 }
 0x1be   : > { %v3907_v23 = vpop.eup %3906 }
 0x1bf   : > { %v637_v27 = vmul.f32 %v3907_v23, %v3905_v17 }
 0x1c1   : > { %v638_v31 = vmul.f32 %v637_v27, %v4223_v26 }
 0x1c3   : > { %3252 = vmatmul.msk.f32.vlgmr.msrb.gmra.mxu3 %vm632_vm1, %v638_v31  ;;  %713 = vst.msk [vmem:[%s4419_s18] sm:$0xff] %vm632_vm1, %v638_v31 }
 0x1c4   : > { %791 = vmatpush.msrb.mxu3 %v4220_v25 }
 0x1c6   : > { %792 = vmatpush.msrb.mxu3 %v4233_v28 }
 0x1c8   : > { %793 = vmatpush.msrb.mxu3 %v4238_v29 }
 0x1ca   : > { %794 = vmatpush.msrb.mxu3 %v4259_v33 }
 0x1cc   : > { %795 = vmatpush.msrb.mxu3 %v4281_v37 }
 0x1ce   : > { %796 = vmatpush.msrb.mxu3 %v4294_v39 }
 0x1d0   : > { %797 = vmatpush.msrb.mxu3 %v4309_v42 }
 0x1d2   : > { %798 = vmatpush.msrb.mxu3 %v4324_v45 }
 0x246   : > { %v660_v35 = vpop.f32.mrf.mxu3 }
 0x247   : > { %v661_v40 = vadd.f32 %v660_v35, %v427_v11 }
 0x249   : > { %v667_v44 = vadd.f32 %v3892_v32, %v661_v40 }
 0x24b   : > { %3908 = vtanh.f32 %v667_v44  ;;  %v3253_v47 = vmul.f32 -1.442695, %v667_v44 }
 0x24d   : > { %3910 = vpow2.f32 %v3253_v47 }
 0x251   : > { %v3909_v46 = vpop.eup %3908 }
 0x252   : > { %690 = vrot.lane.b32.xlu0 %v3909_v46, %s4039_s20 }
 0x253   : > { %v3911_v48 = vpop.eup %3910 }
 0x254   : > { %v671_v49 = vadd.f32 1.0, %v3911_v48 }
 0x256   : > { %3912 = vrcp.f32 %v671_v49  ;;  %v683_v55 = vand.u32 2147483648, %v671_v49  ;;  %vm677_vm3 = vweird.f32 %v671_v49  ;;  %v681_v56 = vand.u32 2147483647, %v671_v49 }
 0x258   : > { %v684_v58 = vor.u32 1.1754944e-38, %v683_v55  ;;  %vm682_vm5 = vcmp.eq.f32.partialorder %v681_v56, 8.507059e+37  ;;  %v3893_v55 = vld [vmem:[%s5403_s6] ss:$0 sm:$0xff] }
 0x25c   : > { %v3913_v50 = vpop.eup %3912 }
 0x25d   : > { %v673_v51 = vmul.f32 %v3913_v50, %v671_v49  ;;  %vm678_vm2 = vweird.f32 %v3913_v50 }
 0x25e   : > { %vm679_vm4 = vmor %vm677_vm3, %vm678_vm2 }
 0x25f   : > { %v674_v52 = vsub.f32 1.0, %v673_v51 }
 0x261   : > { %v675_v53 = vmul.f32 %v3913_v50, %v674_v52 }
 0x263   : > { %v676_v54 = vadd.f32 %v3913_v50, %v675_v53 }
 0x265   : > { %v680_v57 = vsel %vm679_vm4, %v3913_v50, %v676_v54 }
 0x266   : > { %v685_v60 = vsel %vm682_vm5, %v684_v58, %v680_v57 }
 0x267   : > { %v688_v63 = vmul.f32 %v685_v60, %v4215_v24  ;;  %v3762_v24 = vld [vmem:[%s5400_s3 + $0x30] sm:$0xff] }
 0x268   : > { %938 = vmatpush.bf16.msrb.mxu0 %v3762_v24 }
 0x26c   : > { %939 = vmatpush.bf16.msrb.mxu0 %v3761_v9 }
 0x270   : > { %940 = vmatpush.bf16.msrb.mxu0 %v3760_v10  ;;  %v3779_v10 = vld [vmem:[%s5400_s3 + $0x38] sm:$0xff] }
 0x274   : > { %941 = vmatpush.bf16.msrb.mxu0 %v3759_v12  ;;  %v3778_v12 = vld [vmem:[%s5400_s3 + $0x30] sm:$0xff] }
 0x278   : > { %942 = vmatpush.bf16.msrb.mxu0 %v3758_v14  ;;  %v3777_v14 = vld [vmem:[%s5400_s3 + $0x28] sm:$0xff] }
 0x2c4   : > { %v691_v59 = vpop.permute.xlu0 %690 }
 0x2c5   : > { %v693_v61 = vmul.f32 %v691_v59, %v685_v60 }
 0x2c7   : > { %695 = vrot.lane.b32.xlu1 %v693_v61, %s4040_s21 }
 0x339   : > { %v696_v0 = vpop.permute.xlu1 %695 }
 0x33a   : > { %v698_v1 = vadd.f32 %v696_v0, %v688_v63 }
 0x33c   : > { %3914 = vtanh.f32 %v698_v1 }
 0x342   : > { %v3915_v2 = vpop.eup %3914 }
 0x343   : > { %701 = vrot.lane.b32.xlu1 %v3915_v2, %s4039_s20 }
 0x34b   : > { %970 = vrot.lane.b32.xlu1 %v4223_v26, %s4041_s25  ;;  %s4045_s25 = smov 88  }
 0x3b5   : > { %v702_v4 = vpop.permute.xlu1 %701 }
 0x3b6   : > { %v704_v5 = vmul.f32 %v702_v4, %v685_v60 }
 0x3b8   : > { %706 = vrot.lane.b32.xlu2 %v704_v5, %s4040_s21 }
 0x3bd   : > { %v971_v52 = vpop.permute.xlu1 %970 }
 0x412   : > { %v707_v11 = vpop.permute.xlu2 %706 }
 0x413   : > { %710 = vst.msk [vmem:[#allocation2] sm:$0xff] %vm709_vm6, %v707_v11 }
 0x414   : > { %712 = vst.msk [vmem:[#allocation2] sm:$0xff] %vm711_vm7, %v698_v1 }
 0x415   : > { %714 = vst.msk [vmem:[%s4463_s19] sm:$0xff] %vm709_vm6, %v707_v11  ;;  %v3787_v11 = vld [vmem:[%s5400_s3 + $0x78] sm:$0xff] }
 0x41b   : > { %v4472_v13 = vld [vmem:[#allocation2] sm:$0xff] }
 0x41c   : > { %3254 = vmatmul.msk.f32.vlgmr.msra.gmra.mxu3 %vm337_vm0, %v4472_v13  ;;  %3255 = vmatmul.msk.f32.vlgmr.msra.gmra.mxu0 %vm337_vm0, %v4472_v13 }
 0x41d   : > { %993 = vmatpush.msra.mxu3 %v4402_v19 }
 0x424   : > { %3256 = vmatmul.msk.f32.vlgmr.msrb.gmra.mxu3 %vm337_vm0, %v4472_v13 }
 0x425   : > { %1091 = vmatpush.msrb.mxu3 %v4198_v20  ;;  %v3769_v20 = vld [vmem:[%s5400_s3 + $0x68] sm:$0xff] }
 0x426   : > { %952 = vmatpush.bf16.msra.mxu1 %v3769_v20  ;;  %v3785_v20 = vld [vmem:[%s5400_s3 + $0x68] sm:$0xff] }
 0x427   : > { %1092 = vmatpush.msrb.mxu3 %v4203_v21  ;;  %v3757_v21 = vld [vmem:[%s5400_s3 + $0x8] sm:$0xff] }
 0x428   : > { %943 = vmatpush.bf16.msrb.mxu0 %v3757_v21  ;;  %v3776_v21 = vld [vmem:[%s5400_s3 + $0x20] sm:$0xff] }
 0x429   : > { %1093 = vmatpush.msrb.mxu3 %v4243_v30  ;;  %v3768_v30 = vld [vmem:[%s5400_s3 + $0x60] sm:$0xff] }
 0x42a   : > { %953 = vmatpush.bf16.msra.mxu1 %v3768_v30 }
 0x42b   : > { %1094 = vmatpush.msrb.mxu3 %v4264_v34  ;;  %v3756_v34 = vld [vmem:[%s5400_s3] sm:$0xff] }
 0x42c   : > { %944 = vmatpush.bf16.msrb.mxu0 %v3756_v34  ;;  %v3775_v34 = vld [vmem:[%s5400_s3 + $0x18] sm:$0xff] }
 0x42d   : > { %1095 = vmatpush.msrb.mxu3 %v4276_v36  ;;  %v3767_v36 = vld [vmem:[%s5400_s3 + $0x58] sm:$0xff] }
 0x42e   : > { %954 = vmatpush.bf16.msra.mxu1 %v3767_v36 }
 0x42f   : > { %1096 = vmatpush.msrb.mxu3 %v4289_v38  ;;  %v3766_v38 = vld [vmem:[%s5400_s3 + $0x50] sm:$0xff] }
 0x430   : > { %1277 = vmatpush.bf16.msra.mxu0 %v3779_v10 }
 0x431   : > { %1097 = vmatpush.msrb.mxu3 %v4304_v41  ;;  %v3765_v41 = vld [vmem:[%s5400_s3 + $0x48] sm:$0xff] }
 0x432   : > { %955 = vmatpush.bf16.msra.mxu1 %v3766_v38  ;;  %v3774_v38 = vld [vmem:[%s5400_s3 + $0x10] sm:$0xff] }
 0x433   : > { %1098 = vmatpush.msrb.mxu3 %v4316_v43  ;;  %v3764_v43 = vld [vmem:[%s5400_s3 + $0x40] sm:$0xff] }
 0x434   : > { %1278 = vmatpush.bf16.msra.mxu0 %v3778_v12 }
 0x436   : > { %956 = vmatpush.bf16.msra.mxu1 %v3765_v41  ;;  %v3784_v41 = vld [vmem:[%s5400_s3 + $0x60] sm:$0xff] }
 0x438   : > { %1279 = vmatpush.bf16.msra.mxu0 %v3777_v14  ;;  %v4622_v14 = vld [vmem:[%s5401_s4 + $0xa8] sm:$0xff] }
 0x43a   : > { %957 = vmatpush.bf16.msra.mxu1 %v3764_v43  ;;  %v3773_v43 = vld [vmem:[%s5400_s3 + $0x8] sm:$0xff] }
 0x43c   : > { %1280 = vmatpush.bf16.msra.mxu0 %v3776_v21  ;;  %v4633_v21 = vld [vmem:[%s5401_s4 + $0xb0] sm:$0xff] }
 0x43e   : > { %1290 = vmatpush.bf16.msrb.mxu1 %v3787_v11 }
 0x440   : > { %1281 = vmatpush.bf16.msra.mxu0 %v3775_v34  ;;  %v4644_v34 = vld [vmem:[%s5401_s4 + $0x98] sm:$0xff] }
 0x444   : > { %1282 = vmatpush.bf16.msra.mxu0 %v3774_v38  ;;  %v4655_v38 = vld [vmem:[%s5401_s4 + $0x60] sm:$0xff] }
 0x448   : > { %1283 = vmatpush.bf16.msra.mxu0 %v3773_v43  ;;  %v4669_v43 = vld [vmem:[%s5401_s4 + $0x30] sm:$0xff] }
 0x499   : > { %v780_v15 = vpop.f32.mrf.mxu0 }
 0x49a   : > { %v803_v16 = vadd.f32 %v780_v15, %v4389_v62  ;;  %v3783_v15 = vld [vmem:[%s5400_s3 + $0x58] sm:$0xff] }
 0x49c   : > { %3916 = vtanh.f32 %v803_v16  ;;  %v3772_v16 = vld [vmem:[%s5400_s3] sm:$0xff] }
 0x49d   : > { %1284 = vmatpush.bf16.msra.mxu0 %v3772_v16 }
 0x49f   : > { %v760_v17 = vpop.f32.mrf.mxu3 }
 0x4a2   : > { %v3917_v18 = vpop.eup %3916 }
 0x4a3   : > { %v807_v19 = vpack.c.bf16 %v3917_v18, %v3917_v18  ;;  %v3781_v18 = vld [vmem:[%s5400_s3 + $0x48] sm:$0xff] }
 0x4a5   : > { %945 = vmatmul.bf16.vlgmr.msrb.gmra.mxu0 %v807_v19  ;;  %v3780_v19 = vld [vmem:[%s5400_s3 + $0x40] sm:$0xff] }
 0x4a7   : > { %v800_v22 = vpop.f32.mrf.mxu3 }
 0x4a8   : > { %v804_v23 = vadd.f32 %v800_v22, %v4395_v3 }
 0x4aa   : > { %3918 = vtanh.f32 %v804_v23 }
 0x4b0   : > { %v3919_v27 = vpop.eup %3918 }
 0x4b1   : > { %v808_v31 = vpack.c.bf16 %v3919_v27, %v3919_v27 }
 0x4b3   : > { %958 = vmatmul.bf16.vlgmr.msra.gmra.mxu1 %v808_v31 }
 0x522   : > { %v946_v32 = vpop.f32.mrf.mxu0 }
 0x52a   : > { %v948_v35 = vpop.f32.mrf.mxu0 }
 0x530   : > { %v959_v40 = vpop.f32.mrf.mxu1 }
 0x531   : > { %v960_v44 = vadd.f32 %v959_v40, %v946_v32 }
 0x533   : > { %v963_v46 = vmul.f32 1.442695, %v960_v44 }
 0x535   : > { %3920 = vpow2.f32 %v963_v46 }
 0x538   : > { %v961_v47 = vpop.f32.mrf.mxu1 }
 0x53b   : > { %v3921_v48 = vpop.eup %3920 }
 0x53c   : > { %v965_v49 = vsel %vm632_vm1, %v3921_v48, 0.0 }
 0x53d   : > { %966 = vadd.xlane.f32.xlu2 %v965_v49 }
 0x5b0   : > { %v967_v50 = vpop.xlane.xlu2 %966 }
 0x5b1   : > { %3922 = vrcp.f32 %v967_v50 }
 0x5b7   : > { %v3923_v51 = vpop.eup %3922 }
 0x5b8   : > { %v969_v53 = vmul.f32 %v3923_v51, %v3921_v48 }
 0x5ba   : > { %v4520_v54 = vmul.f32 %v971_v52, %v969_v53 }
 0x5bc   : > { %3321 = vmatmul.msk.f32.vlgmr.msra.gmra.mxu3 %vm632_vm1, %v4520_v54 }
 0x5bd   : > { %1131 = vmatpush.msra.mxu3 %v4220_v25 }
 0x5bf   : > { %1132 = vmatpush.msra.mxu3 %v4233_v28 }
 0x5c1   : > { %1133 = vmatpush.msra.mxu3 %v4238_v29 }
 0x5c3   : > { %1134 = vmatpush.msra.mxu3 %v4259_v33 }
 0x5c5   : > { %1135 = vmatpush.msra.mxu3 %v4281_v37 }
 0x5c7   : > { %1136 = vmatpush.msra.mxu3 %v4294_v39 }
 0x5c9   : > { %1137 = vmatpush.msra.mxu3 %v4309_v42 }
 0x5cb   : > { %1138 = vmatpush.msra.mxu3 %v4324_v45 }
 0x63f   : > { %v995_v56 = vpop.f32.mrf.mxu3 }
 0x640   : > { %v996_v25 = vadd.f32 %v995_v56, %v760_v17  ;;  %v3782_v17 = vld [vmem:[%s5400_s3 + $0x50] sm:$0xff] }
 0x642   : > { %v1002_v57 = vadd.f32 %v3893_v55, %v996_v25 }
 0x644   : > { %3924 = vtanh.f32 %v1002_v57  ;;  %v3322_v29 = vmul.f32 -1.442695, %v1002_v57 }
 0x646   : > { %3926 = vpow2.f32 %v3322_v29 }
 0x64a   : > { %v3925_v28 = vpop.eup %3924 }
 0x64b   : > { %1025 = vrot.lane.b32.xlu1 %v3925_v28, %s4039_s20 }
 0x64c   : > { %v3927_v33 = vpop.eup %3926 }
 0x64d   : > { %v1006_v37 = vadd.f32 1.0, %v3927_v33 }
 0x64f   : > { %3928 = vrcp.f32 %v1006_v37  ;;  %v1018_v60 = vand.u32 2147483648, %v1006_v37  ;;  %vm1012_vm9 = vweird.f32 %v1006_v37  ;;  %v1016_v61 = vand.u32 2147483647, %v1006_v37 }
 0x651   : > { %v1019_v0 = vor.u32 1.1754944e-38, %v1018_v60  ;;  %vm1017_vm11 = vcmp.eq.f32.partialorder %v1016_v61, 8.507059e+37 }
 0x655   : > { %v3929_v39 = vpop.eup %3928 }
 0x656   : > { %v1008_v42 = vmul.f32 %v3929_v39, %v1006_v37  ;;  %vm1013_vm8 = vweird.f32 %v3929_v39 }
 0x657   : > { %vm1014_vm10 = vmor %vm1012_vm9, %vm1013_vm8 }
 0x658   : > { %v1009_v58 = vsub.f32 1.0, %v1008_v42 }
 0x65a   : > { %v1010_v45 = vmul.f32 %v3929_v39, %v1009_v58 }
 0x65c   : > { %v1011_v59 = vadd.f32 %v3929_v39, %v1010_v45 }
 0x65e   : > { %v1015_v63 = vsel %vm1014_vm10, %v3929_v39, %v1011_v59 }
 0x65f   : > { %v1020_v2 = vsel %vm1017_vm11, %v1019_v0, %v1015_v63 }
 0x660   : > { %v1023_v5 = vmul.f32 %v1020_v2, %v4472_v13  ;;  %v3786_v13 = vld [vmem:[%s5400_s3 + $0x70] sm:$0xff] }
 0x661   : > { %1291 = vmatpush.bf16.msrb.mxu1 %v3786_v13 }
 0x665   : > { %1292 = vmatpush.bf16.msrb.mxu1 %v3785_v20  ;;  %v4627_v20 = vld [vmem:[%s5401_s4 + $0x90] sm:$0xff] }
 0x669   : > { %1293 = vmatpush.bf16.msrb.mxu1 %v3784_v41  ;;  %v4662_v41 = vld [vmem:[%s5401_s4 + $0x48] sm:$0xff] }
 0x66d   : > { %1294 = vmatpush.bf16.msrb.mxu1 %v3783_v15  ;;  %v4675_v15 = vld [vmem:[%s5401_s4 + $0x18] sm:$0xff] }
 0x671   : > { %1295 = vmatpush.bf16.msrb.mxu1 %v3782_v17 }
 0x675   : > { %1296 = vmatpush.bf16.msrb.mxu1 %v3781_v18  ;;  %v4686_v18 = vld [vmem:[%s5401_s4 + $0x68] sm:$0xff] }
 0x679   : > { %1297 = vmatpush.bf16.msrb.mxu1 %v3780_v19  ;;  %v4691_v19 = vld [vmem:[%s5401_s4] sm:$0xff] }
 0x6bd   : > { %v1026_v1 = vpop.permute.xlu1 %1025 }
 0x6be   : > { %v1028_v4 = vmul.f32 %v1026_v1, %v1020_v2 }
 0x6c0   : > { %1030 = vrot.lane.b32.xlu0 %v1028_v4, %s4040_s21 }
 0x732   : > { %v1031_v6 = vpop.permute.xlu0 %1030 }
 0x733   : > { %v1033_v7 = vadd.f32 %v1031_v6, %v1023_v5 }
 0x735   : > { %3930 = vtanh.f32 %v1033_v7 }
 0x73b   : > { %v3931_v24 = vpop.eup %3930 }
 0x73c   : > { %1036 = vrot.lane.b32.xlu1 %v3931_v24, %s4039_s20 }
 0x7ae   : > { %v1037_v8 = vpop.permute.xlu1 %1036 }
 0x7af   : > { %v4539_v9 = vmul.f32 %v1037_v8, %v1020_v2 }
 0x7b1   : > { %1041 = vrot.lane.b32.xlu0 %v4539_v9, %s4040_s21 }
 0x7b9   : > { %1310 = vrot.lane.b32.xlu0 %v4223_v26, %s4042_s9  ;;  %v3894_v26 = vld [vmem:[%s5403_s6] ss:$0 sm:$0xff]  ;;  %s4049_s9 = smov 16  }
 0x823   : > { %v1042_v30 = vpop.permute.xlu0 %1041 }
 0x824   : > { %1044 = vst.msk [vmem:[#allocation2] sm:$0xff] %vm709_vm6, %v1042_v30  ;;  %v4638_v30 = vld [vmem:[%s5401_s4 + $0x78] sm:$0xff] }
 0x825   : > { %1045 = vst.msk [vmem:[#allocation2] sm:$0xff] %vm711_vm7, %v1033_v7 }
 0x82b   : > { %v1311_v57 = vpop.permute.xlu0 %1310 }
 0x82c   : > { %v4569_v36 = vld [vmem:[#allocation2] sm:$0xff] }
 0x82d   : > { %3323 = vmatmul.msk.f32.vlgmr.msrb.gmra.mxu3 %vm337_vm0, %v4569_v36  ;;  %3324 = vmatmul.msk.f32.vlgmr.msra.gmra.mxu2 %vm337_vm0, %v4569_v36 }
 0x82e   : > { %1432 = vmatpush.msra.mxu2 %v4622_v14  ;;  %1452 = vmatpush.msrb.mxu3 %v4633_v21 }
 0x830   : > { %1433 = vmatpush.msra.mxu2 %v4627_v20  ;;  %1453 = vmatpush.msrb.mxu3 %v4644_v34 }
 0x832   : > { %1434 = vmatpush.msra.mxu2 %v4638_v30 }
 0x834   : > { %1435 = vmatpush.msra.mxu2 %v4655_v38 }
 0x835   : > { %3325 = vmatmul.msk.f32.vlgmr.msra.gmra.mxu3 %vm337_vm0, %v4569_v36 }
 0x836   : > { %1436 = vmatpush.msra.mxu2 %v4662_v41 }
 0x838   : > { %1437 = vmatpush.msra.mxu2 %v4669_v43 }
 0x83a   : > { %1438 = vmatpush.msra.mxu2 %v4675_v15 }
 0x83c   : > { %1439 = vmatpush.msra.mxu2 %v4691_v19 }
 0x8b0   : > { %v1100_v22 = vpop.f32.mrf.mxu3  ;;  %v1120_v23 = vpop.f32.mrf.mxu2 }
 0x8b1   : > { %v1143_v27 = vadd.f32 %v1120_v23, %v4389_v62  ;;  %v4703_v23 = vld [vmem:[%s5401_s4 + $0xb8] sm:$0xff] }
 0x8b3   : > { %3932 = vtanh.f32 %v1143_v27  ;;  %v4708_v27 = vld [vmem:[%s5401_s4 + $0xa0] sm:$0xff] }
 0x8b8   : > { %v1140_v31 = vpop.f32.mrf.mxu3 }
 0x8b9   : > { %v3933_v32 = vpop.eup %3932  ;;  %v1144_v35 = vadd.f32 %v1140_v31, %v4395_v3  ;;  %v4714_v31 = vld [vmem:[%s5401_s4 + $0x38] sm:$0xff] }
 0x8ba   : > { %v1147_v40 = vpack.c.bf16 %v3933_v32, %v3933_v32  ;;  %v4720_v32 = vld [vmem:[%s5401_s4 + $0x88] sm:$0xff] }
 0x8bb   : > { %3934 = vtanh.f32 %v1144_v35  ;;  %v4726_v35 = vld [vmem:[%s5401_s4 + $0x20] sm:$0xff] }
 0x8bc   : > { %1285 = vmatmul.bf16.vlgmr.msra.gmra.mxu0 %v1147_v40  ;;  %v4732_v40 = vld [vmem:[%s5401_s4 + $0x70] sm:$0xff] }
 0x8c1   : > { %v3935_v44 = vpop.eup %3934 }
 0x8c2   : > { %v1148_v46 = vpack.c.bf16 %v3935_v44, %v3935_v44  ;;  %v4738_v44 = vld [vmem:[%s5401_s4 + $0x8] sm:$0xff] }
 0x8c4   : > { %1298 = vmatmul.bf16.vlgmr.msrb.gmra.mxu1 %v1148_v46  ;;  %v4745_v46 = vld [vmem:[%s5401_s4 + $0x58] sm:$0xff] }
 0x939   : > { %v1286_v47 = vpop.f32.mrf.mxu0 }
 0x941   : > { %v1288_v48 = vpop.f32.mrf.mxu0  ;;  %v1299_v49 = vpop.f32.mrf.mxu1 }
 0x942   : > { %v1300_v50 = vadd.f32 %v1299_v49, %v1286_v47  ;;  %v4751_v47 = vld [vmem:[%s5401_s4 + $0x40] sm:$0xff]  ;;  %v4757_v48 = vld [vmem:[%s5401_s4 + $0x28] sm:$0xff]  ;;  %v4763_v49 = vld [vmem:[%s5401_s4 + $0x10] sm:$0xff] }
 0x944   : > { %v1303_v51 = vmul.f32 1.442695, %v1300_v50  ;;  %v3795_v50 = vld [vmem:[%s5400_s3 + $0x38] sm:$0xff] }
 0x946   : > { %3936 = vpow2.f32 %v1303_v51  ;;  %v3803_v51 = vld [vmem:[%s5400_s3 + $0x78] sm:$0xff] }
 0x947   : > { %1631 = vmatpush.bf16.msrb.mxu0 %v3803_v51 }
 0x949   : > { %v1301_v52 = vpop.f32.mrf.mxu1 }
 0x94a   : > { %v3794_v52 = vld [vmem:[%s5400_s3 + $0x30] sm:$0xff] }
 0x94c   : > { %v3937_v53 = vpop.eup %3936 }
 0x94d   : > { %v1305_v55 = vsel %vm632_vm1, %v3937_v53, 0.0 }
 0x94e   : > { %1306 = vadd.xlane.f32.xlu1 %v1305_v55  ;;  %v3793_v55 = vld [vmem:[%s5400_s3 + $0x28] sm:$0xff] }
 0x9c1   : > { %v1307_v56 = vpop.xlane.xlu1 %1306 }
 0x9c2   : > { %3938 = vrcp.f32 %v1307_v56  ;;  %v3801_v56 = vld [vmem:[%s5400_s3 + $0x68] sm:$0xff] }
 0x9c8   : > { %v3939_v25 = vpop.eup %3938 }
 0x9c9   : > { %v1309_v28 = vmul.f32 %v3939_v25, %v3937_v53  ;;  %v3802_v53 = vld [vmem:[%s5400_s3 + $0x70] sm:$0xff]  ;;  %v3792_v25 = vld [vmem:[%s5400_s3 + $0x20] sm:$0xff] }
 0x9ca   : > { %1632 = vmatpush.bf16.msrb.mxu0 %v3802_v53 }
 0x9cb   : > { %v4605_v29 = vmul.f32 %v1311_v57, %v1309_v28  ;;  %v3791_v28 = vld [vmem:[%s5400_s3 + $0x18] sm:$0xff] }
 0x9cd   : > { %3390 = vmatmul.msk.f32.vlgmr.msrb.gmra.mxu2 %vm632_vm1, %v4605_v29 }
 0x9ce   : > { %1472 = vmatpush.msrb.mxu2 %v4703_v23  ;;  %1633 = vmatpush.bf16.msrb.mxu0 %v3801_v56 }
 0x9d0   : > { %1473 = vmatpush.msrb.mxu2 %v4708_v27 }
 0x9d2   : > { %1474 = vmatpush.msrb.mxu2 %v4720_v32 }
 0x9d4   : > { %1475 = vmatpush.msrb.mxu2 %v4732_v40 }
 0x9d6   : > { %1476 = vmatpush.msrb.mxu2 %v4745_v46 }
 0x9d8   : > { %1477 = vmatpush.msrb.mxu2 %v4751_v47 }
 0x9da   : > { %1478 = vmatpush.msrb.mxu2 %v4757_v48 }
 0x9dc   : > { %1479 = vmatpush.msrb.mxu2 %v4763_v49 }
 0xa50   : > { %v1335_v33 = vpop.f32.mrf.mxu2 }
 0xa51   : > { %v1336_v37 = vadd.f32 %v1335_v33, %v1100_v22  ;;  %v4696_v22 = vld [vmem:[%s5401_s4 + $0x50] sm:$0xff] }
 0xa52   : > { %v3790_v33 = vld [vmem:[%s5400_s3 + $0x10] sm:$0xff] }
 0xa53   : > { %v1342_v39 = vadd.f32 %v3894_v26, %v1336_v37  ;;  %v3800_v37 = vld [vmem:[%s5400_s3 + $0x60] sm:$0xff] }
 0xa54   : > { %1634 = vmatpush.bf16.msrb.mxu0 %v3800_v37 }
 0xa55   : > { %3940 = vtanh.f32 %v1342_v39  ;;  %v3391_v58 = vmul.f32 -1.442695, %v1342_v39  ;;  %v3789_v39 = vld [vmem:[%s5400_s3 + $0x8] sm:$0xff] }
 0xa57   : > { %3942 = vpow2.f32 %v3391_v58  ;;  %v3788_v58 = vld [vmem:[%s5400_s3] sm:$0xff] }
 0xa5b   : > { %v3941_v42 = vpop.eup %3940 }
 0xa5c   : > { %1365 = vrot.lane.b32.xlu2 %v3941_v42, %s4039_s20  ;;  %v3799_v42 = vld [vmem:[%s5400_s3 + $0x58] sm:$0xff] }
 0xa5d   : > { %v3943_v45 = vpop.eup %3942  ;;  %1635 = vmatpush.bf16.msrb.mxu0 %v3799_v42 }
 0xa5e   : > { %v1346_v59 = vadd.f32 1.0, %v3943_v45  ;;  %v3798_v45 = vld [vmem:[%s5400_s3 + $0x50] sm:$0xff] }
 0xa60   : > { %3944 = vrcp.f32 %v1346_v59  ;;  %v1358_v2 = vand.u32 2147483648, %v1346_v59  ;;  %vm1352_vm13 = vweird.f32 %v1346_v59  ;;  %v1356_v4 = vand.u32 2147483647, %v1346_v59 }
 0xa61   : > { %1636 = vmatpush.bf16.msrb.mxu0 %v3798_v45 }
 0xa62   : > { %v1359_v6 = vor.u32 1.1754944e-38, %v1358_v2  ;;  %vm1357_vm15 = vcmp.eq.f32.partialorder %v1356_v4, 8.507059e+37 }
 0xa66   : > { %v3945_v60 = vpop.eup %3944 }
 0xa67   : > { %v1348_v61 = vmul.f32 %v3945_v60, %v1346_v59  ;;  %vm1353_vm12 = vweird.f32 %v3945_v60  ;;  %v3797_v59 = vld [vmem:[%s5400_s3 + $0x48] sm:$0xff] }
 0xa68   : > { %vm1354_vm14 = vmor %vm1352_vm13, %vm1353_vm12  ;;  %1637 = vmatpush.bf16.msrb.mxu0 %v3797_v59 }
 0xa69   : > { %v1349_v63 = vsub.f32 1.0, %v1348_v61 }
 0xa6b   : > { %v1350_v0 = vmul.f32 %v3945_v60, %v1349_v63 }
 0xa6d   : > { %v1351_v1 = vadd.f32 %v3945_v60, %v1350_v0 }
 0xa6f   : > { %v1355_v5 = vsel %vm1354_vm14, %v3945_v60, %v1351_v1  ;;  %v3796_v60 = vld [vmem:[%s5400_s3 + $0x40] sm:$0xff] }
 0xa70   : > { %v1360_v24 = vsel %vm1357_vm15, %v1359_v6, %v1355_v5  ;;  %1638 = vmatpush.bf16.msrb.mxu0 %v3796_v60 }
 0xa71   : > { %v1363_v10 = vmul.f32 %v1360_v24, %v4569_v36  ;;  %v4650_v36 = vld [vmem:[%s5401_s4 + $0x80] sm:$0xff] }
 0xa72   : > { %1454 = vmatpush.msrb.mxu3 %v4650_v36 }
 0xa74   : > { %1455 = vmatpush.msrb.mxu3 %v4686_v18 }
 0xa76   : > { %1456 = vmatpush.msrb.mxu3 %v4696_v22 }
 0xa78   : > { %1457 = vmatpush.msrb.mxu3 %v4714_v31 }
 0xa7a   : > { %1458 = vmatpush.msrb.mxu3 %v4726_v35 }
 0xa7c   : > { %1459 = vmatpush.msrb.mxu3 %v4738_v44 }
 0xa7e   : > { %1618 = vmatpush.bf16.msra.mxu3 %v3795_v50 }
 0xa82   : > { %1619 = vmatpush.bf16.msra.mxu3 %v3794_v52 }
 0xa86   : > { %1620 = vmatpush.bf16.msra.mxu3 %v3793_v55 }
 0xa8a   : > { %1621 = vmatpush.bf16.msra.mxu3 %v3792_v25 }
 0xa8e   : > { %1622 = vmatpush.bf16.msra.mxu3 %v3791_v28  ;;  %v3895_v28 = vld [vmem:[%s5403_s6] ss:$0 sm:$0xff] }
 0xa92   : > { %1623 = vmatpush.bf16.msra.mxu3 %v3790_v33 }
 0xa96   : > { %1624 = vmatpush.bf16.msra.mxu3 %v3789_v39 }
 0xa9a   : > { %1625 = vmatpush.bf16.msra.mxu3 %v3788_v58 }
 0xab6   : > { %v1366_v7 = vpop.permute.xlu2 %1365 }
 0xab7   : > { %v1368_v8 = vmul.f32 %v1366_v7, %v1360_v24 }
 0xab9   : > { %1370 = vrot.lane.b32.xlu0 %v1368_v8, %s4040_s21  ;;  %v4851_v8 = vld [vmem:[%s5402_s5] sm:$0xff] }
 0xaba   : > { %1674 = vmatpush.msra.mxu1 %v4851_v8 }
 0xabc   : > { %1790 = vmatpush.msrb.mxu1 %v4633_v21 }
 0xabe   : > { %1791 = vmatpush.msrb.mxu1 %v4644_v34 }
 0xac0   : > { %1792 = vmatpush.msrb.mxu1 %v4650_v36 }
 0xac2   : > { %1793 = vmatpush.msrb.mxu1 %v4686_v18 }
 0xac4   : > { %1794 = vmatpush.msrb.mxu1 %v4696_v22 }
 0xac6   : > { %1795 = vmatpush.msrb.mxu1 %v4714_v31 }
 0xac8   : > { %1796 = vmatpush.msrb.mxu1 %v4726_v35 }
 0xaca   : > { %1797 = vmatpush.msrb.mxu1 %v4738_v44 }
 0xb2b   : > { %v1371_v11 = vpop.permute.xlu0 %1370 }
 0xb2c   : > { %v4615_v12 = vadd.f32 %v1371_v11, %v1363_v10 }
 0xb2e   : > { %3946 = vtanh.f32 %v4615_v12 }
 0xb34   : > { %v3947_v13 = vpop.eup %3946 }
 0xb35   : > { %1376 = vrot.lane.b32.xlu0 %v3947_v13, %s4039_s20 }
 0xba7   : > { %v1377_v16 = vpop.permute.xlu0 %1376 }
 0xba8   : > { %v4679_v17 = vmul.f32 %v1377_v16, %v1360_v24  ;;  %v4845_v24 = vld [vmem:[%s4190_s26] sm:$0xff] }
 0xbaa   : > { %1381 = vrot.lane.b32.xlu0 %v4679_v17, %s4040_s21 }
 0xbb2   : > { %1651 = vrot.lane.b32.xlu0 %v4845_v24, %s4043_s12  ;;  %s4052_s12 = smov 24  }
 0xc1c   : > { %v1382_v57 = vpop.permute.xlu0 %1381 }
 0xc1d   : > { %1384 = vst.msk [vmem:[#allocation2] sm:$0xff] %vm709_vm6, %v1382_v57 }
 0xc1e   : > { %1385 = vst.msk [vmem:[#allocation2] sm:$0xff] %vm711_vm7, %v4615_v12 }
 0xc24   : > { %v1652_v56 = vpop.permute.xlu0 %1651 }
 0xc25   : > { %v4794_v26 = vld [vmem:[#allocation2] sm:$0xff] }
 0xc26   : > { %3392 = vmatmul.msk.f32.vlgmr.msra.gmra.mxu2 %vm337_vm0, %v4794_v26  ;;  %3393 = vmatmul.msk.f32.vlgmr.msrb.gmra.mxu3 %vm337_vm0, %v4794_v26 }
 0xc27   : > { %1770 = vmatpush.msra.mxu2 %v4622_v14 }
 0xc29   : > { %1771 = vmatpush.msra.mxu2 %v4627_v20 }
 0xc2b   : > { %1772 = vmatpush.msra.mxu2 %v4638_v30 }
 0xc2d   : > { %1773 = vmatpush.msra.mxu2 %v4655_v38 }
 0xc2e   : > { %3394 = vmatmul.msk.f32.vlgmr.msrb.gmra.mxu2 %vm337_vm0, %v4794_v26 }
 0xc2f   : > { %1774 = vmatpush.msra.mxu2 %v4662_v41 }
 0xc31   : > { %1775 = vmatpush.msra.mxu2 %v4669_v43 }
 0xc33   : > { %1776 = vmatpush.msra.mxu2 %v4675_v15 }
 0xc35   : > { %1777 = vmatpush.msra.mxu2 %v4691_v19 }
 0xc37   : > { %1810 = vmatpush.msrb.mxu2 %v4703_v23 }
 0xc39   : > { %1811 = vmatpush.msrb.mxu2 %v4708_v27 }
 0xc3b   : > { %1812 = vmatpush.msrb.mxu2 %v4720_v32 }
 0xc3d   : > { %1813 = vmatpush.msrb.mxu2 %v4732_v40 }
 0xc3f   : > { %1814 = vmatpush.msrb.mxu2 %v4745_v46 }
 0xc41   : > { %1815 = vmatpush.msrb.mxu2 %v4751_v47 }
 0xc43   : > { %1816 = vmatpush.msrb.mxu2 %v4757_v48 }
 0xc45   : > { %1817 = vmatpush.msrb.mxu2 %v4763_v49 }
 0xca9   : > { %v1441_v61 = vpop.f32.mrf.mxu2  ;;  %v1461_v63 = vpop.f32.mrf.mxu3 }
 0xcaa   : > { %v1484_v0 = vadd.f32 %v1461_v63, %v4389_v62 }
 0xcac   : > { %3948 = vtanh.f32 %v1484_v0 }
 0xcb1   : > { %v1481_v1 = vpop.f32.mrf.mxu2 }
 0xcb2   : > { %v3949_v2 = vpop.eup %3948  ;;  %v1485_v4 = vadd.f32 %v1481_v1, %v4395_v3 }
 0xcb3   : > { %v1488_v5 = vpack.c.bf16 %v3949_v2, %v3949_v2 }
 0xcb4   : > { %3950 = vtanh.f32 %v1485_v4 }
 0xcb5   : > { %1626 = vmatmul.bf16.vlgmr.msra.gmra.mxu3 %v1488_v5 }
 0xcba   : > { %v3951_v6 = vpop.eup %3950 }
 0xcbb   : > { %v1489_v7 = vpack.c.bf16 %v3951_v6, %v3951_v6 }
 0xcbd   : > { %1639 = vmatmul.bf16.vlgmr.msrb.gmra.mxu0 %v1489_v7 }
 0xd38   : > { %v1627_v10 = vpop.f32.mrf.mxu3 }
 0xd3a   : > { %v1640_v11 = vpop.f32.mrf.mxu0 }
 0xd3b   : > { %v1641_v12 = vadd.f32 %v1640_v11, %v1627_v10 }
 0xd3d   : > { %v1644_v13 = vmul.f32 1.442695, %v1641_v12 }
 0xd3f   : > { %3952 = vpow2.f32 %v1644_v13 }
 0xd40   : > { %v1629_v16 = vpop.f32.mrf.mxu3 }
 0xd42   : > { %v1642_v50 = vpop.f32.mrf.mxu0 }
 0xd45   : > { %v3953_v51 = vpop.eup %3952 }
 0xd46   : > { %v1646_v52 = vsel %vm632_vm1, %v3953_v51, 0.0 }
 0xd47   : > { %1647 = vadd.xlane.f32.xlu2 %v1646_v52 }
 0xdba   : > { %v1648_v53 = vpop.xlane.xlu2 %1647 }
 0xdbb   : > { %3954 = vrcp.f32 %v1648_v53  ;;  %v3811_v53 = vld [vmem:[%s5400_s3 + $0x38] sm:$0xff] }
 0xdbc   : > { %1956 = vmatpush.bf16.msrb.mxu3 %v3811_v53 }
 0xdc1   : > { %v3955_v55 = vpop.eup %3954 }
 0xdc2   : > { %v1650_v25 = vmul.f32 %v3955_v55, %v3953_v51  ;;  %v3810_v55 = vld [vmem:[%s5400_s3 + $0x30] sm:$0xff] }
 0xdc3   : > { %1957 = vmatpush.bf16.msrb.mxu3 %v3810_v55 }
 0xdc4   : > { %v4863_v57 = vmul.f32 %v1652_v56, %v1650_v25  ;;  %v3818_v56 = vld [vmem:[%s5400_s3 + $0x70] sm:$0xff]  ;;  %v3809_v25 = vld [vmem:[%s5400_s3 + $0x28] sm:$0xff] }
 0xdc6   : > { %3459 = vmatmul.msk.f32.vlgmr.msra.gmra.mxu1 %vm632_vm1, %v4863_v57 }
 0xdc7   : > { %2012 = vmatpush.msra.mxu1 %v4851_v8  ;;  %1958 = vmatpush.bf16.msrb.mxu3 %v3809_v25 }
 0xe43   : > { %v1676_v33 = vpop.f32.mrf.mxu1 }
 0xe44   : > { %v1677_v37 = vadd.f32 %v1676_v33, %v1441_v61 }
 0xe46   : > { %v1683_v39 = vadd.f32 %v3895_v28, %v1677_v37  ;;  %v3808_v28 = vld [vmem:[%s5400_s3 + $0x20] sm:$0xff]  ;;  %v3807_v37 = vld [vmem:[%s5400_s3 + $0x18] sm:$0xff] }
 0xe47   : > { %1959 = vmatpush.bf16.msrb.mxu3 %v3808_v28 }
 0xe48   : > { %3956 = vtanh.f32 %v1683_v39  ;;  %v3460_v58 = vmul.f32 -1.442695, %v1683_v39 }
 0xe4a   : > { %3958 = vpow2.f32 %v3460_v58 }
 0xe4b   : > { %1960 = vmatpush.bf16.msrb.mxu3 %v3807_v37 }
 0xe4e   : > { %v3957_v42 = vpop.eup %3956 }
 0xe4f   : > { %1706 = vrot.lane.b32.xlu1 %v3957_v42, %s4039_s20 }
 0xe50   : > { %v3959_v45 = vpop.eup %3958 }
 0xe51   : > { %v1687_v59 = vadd.f32 1.0, %v3959_v45 }
 0xe53   : > { %3960 = vrcp.f32 %v1687_v59  ;;  %v1699_v4 = vand.u32 2147483648, %v1687_v59  ;;  %vm1693_vm3 = vweird.f32 %v1687_v59  ;;  %v1697_v5 = vand.u32 2147483647, %v1687_v59 }
 0xe55   : > { %v1700_v6 = vor.u32 1.1754944e-38, %v1699_v4  ;;  %vm1698_vm5 = vcmp.eq.f32.partialorder %v1697_v5, 8.507059e+37 }
 0xe59   : > { %v3961_v60 = vpop.eup %3960 }
 0xe5a   : > { %v1689_v63 = vmul.f32 %v3961_v60, %v1687_v59  ;;  %vm1694_vm2 = vweird.f32 %v3961_v60 }
 0xe5b   : > { %vm1695_vm4 = vmor %vm1693_vm3, %vm1694_vm2 }
 0xe5c   : > { %v1690_v0 = vsub.f32 1.0, %v1689_v63 }
 0xe5e   : > { %v1691_v1 = vmul.f32 %v3961_v60, %v1690_v0  ;;  %v3896_v0 = vld [vmem:[%s5403_s6] ss:$0 sm:$0xff] }
 0xe60   : > { %v1692_v2 = vadd.f32 %v3961_v60, %v1691_v1 }
 0xe62   : > { %v1696_v61 = vsel %vm1695_vm4, %v3961_v60, %v1692_v2 }
 0xe63   : > { %v1701_v10 = vsel %vm1698_vm5, %v1700_v6, %v1696_v61 }
 0xe64   : > { %v1704_v12 = vmul.f32 %v1701_v10, %v4794_v26  ;;  %v3819_v26 = vld [vmem:[%s5400_s3 + $0x78] sm:$0xff] }
 0xe65   : > { %1969 = vmatpush.bf16.msra.mxu0 %v3819_v26 }
 0xe69   : > { %1970 = vmatpush.bf16.msra.mxu0 %v3818_v56 }
 0xec1   : > { %v1707_v7 = vpop.permute.xlu1 %1706 }
 0xec2   : > { %v1709_v11 = vmul.f32 %v1707_v7, %v1701_v10 }
 0xec4   : > { %1711 = vrot.lane.b32.xlu0 %v1709_v11, %s4040_s21 }
 0xf36   : > { %v1712_v13 = vpop.permute.xlu0 %1711 }
 0xf37   : > { %v1714_v16 = vadd.f32 %v1712_v13, %v1704_v12 }
 0xf39   : > { %3962 = vtanh.f32 %v1714_v16 }
 0xf3f   : > { %v3963_v50 = vpop.eup %3962 }
 0xf40   : > { %1717 = vrot.lane.b32.xlu0 %v3963_v50, %s4039_s20 }
 0xfb2   : > { %v1718_v51 = vpop.permute.xlu0 %1717 }
 0xfb3   : > { %v4875_v52 = vmul.f32 %v1718_v51, %v1701_v10 }
 0xfb5   : > { %1722 = vrot.lane.b32.xlu0 %v4875_v52, %s4040_s21 }
 0xfbd   : > { %1989 = vrot.lane.b32.xlu0 %v4845_v24, %s4044_s17 }
0x1027   : > { %v1723_v33 = vpop.permute.xlu0 %1722 }
0x1028   : > { %1725 = vst.msk [vmem:[#allocation2] sm:$0xff] %vm709_vm6, %v1723_v33 }
0x1029   : > { %1726 = vst.msk [vmem:[#allocation2] sm:$0xff] %vm711_vm7, %v1714_v16 }
0x102f   : > { %v1990_v60 = vpop.permute.xlu0 %1989 }
0x1030   : > { %v4902_v39 = vld [vmem:[#allocation2] sm:$0xff] }
0x1031   : > { %3461 = vmatmul.msk.f32.vlgmr.msra.gmra.mxu2 %vm337_vm0, %v4902_v39  ;;  %3462 = vmatmul.msk.f32.vlgmr.msrb.gmra.mxu1 %vm337_vm0, %v4902_v39 }
0x1032   : > { %2127 = vmatpush.msra.mxu2 %v4633_v21  ;;  %2147 = vmatpush.msrb.mxu1 %v4703_v23  ;;  %v3806_v21 = vld [vmem:[%s5400_s3 + $0x10] sm:$0xff]  ;;  %v3815_v23 = vld [vmem:[%s5400_s3 + $0x58] sm:$0xff] }
0x1033   : > { %1961 = vmatpush.bf16.msrb.mxu3 %v3806_v21 }
0x1034   : > { %2128 = vmatpush.msra.mxu2 %v4644_v34  ;;  %2148 = vmatpush.msrb.mxu1 %v4708_v27  ;;  %v3817_v34 = vld [vmem:[%s5400_s3 + $0x68] sm:$0xff]  ;;  %v3814_v27 = vld [vmem:[%s5400_s3 + $0x50] sm:$0xff] }
0x1035   : > { %1971 = vmatpush.bf16.msra.mxu0 %v3817_v34 }
0x1036   : > { %2129 = vmatpush.msra.mxu2 %v4650_v36  ;;  %2149 = vmatpush.msrb.mxu1 %v4720_v32  ;;  %v3805_v36 = vld [vmem:[%s5400_s3 + $0x8] sm:$0xff]  ;;  %v3812_v32 = vld [vmem:[%s5400_s3 + $0x40] sm:$0xff] }
0x1037   : > { %1962 = vmatpush.bf16.msrb.mxu3 %v3805_v36 }
0x1038   : > { %2130 = vmatpush.msra.mxu2 %v4686_v18  ;;  %2150 = vmatpush.msrb.mxu1 %v4732_v40  ;;  %v3816_v18 = vld [vmem:[%s5400_s3 + $0x60] sm:$0xff] }
0x1039   : > { %3463 = vmatmul.msk.f32.vlgmr.msrb.gmra.mxu2 %vm337_vm0, %v4902_v39  ;;  %1972 = vmatpush.bf16.msra.mxu0 %v3816_v18  ;;  %v3835_v18 = vld [vmem:[%s5400_s3 + $0x78] sm:$0xff] }
0x103a   : > { %2131 = vmatpush.msra.mxu2 %v4696_v22  ;;  %2151 = vmatpush.msrb.mxu1 %v4745_v46  ;;  %v3804_v22 = vld [vmem:[%s5400_s3] sm:$0xff] }
0x103b   : > { %1963 = vmatpush.bf16.msrb.mxu3 %v3804_v22  ;;  %v3827_v22 = vld [vmem:[%s5400_s3 + $0x38] sm:$0xff] }
0x103c   : > { %2132 = vmatpush.msra.mxu2 %v4714_v31  ;;  %2152 = vmatpush.msrb.mxu1 %v4751_v47  ;;  %v3813_v31 = vld [vmem:[%s5400_s3 + $0x48] sm:$0xff] }
0x103d   : > { %1973 = vmatpush.bf16.msra.mxu0 %v3815_v23  ;;  %v3826_v23 = vld [vmem:[%s5400_s3 + $0x30] sm:$0xff] }
0x103e   : > { %2133 = vmatpush.msra.mxu2 %v4726_v35  ;;  %2153 = vmatpush.msrb.mxu1 %v4757_v48 }
0x103f   : > { %2306 = vmatpush.bf16.msra.mxu3 %v3835_v18 }
0x1040   : > { %2134 = vmatpush.msra.mxu2 %v4738_v44  ;;  %2154 = vmatpush.msrb.mxu1 %v4763_v49 }
0x1041   : > { %1974 = vmatpush.bf16.msra.mxu0 %v3814_v27  ;;  %v3833_v27 = vld [vmem:[%s5400_s3 + $0x68] sm:$0xff] }
0x1042   : > { %2293 = vmatpush.bf16.msrb.mxu2 %v3827_v22 }
0x1045   : > { %1975 = vmatpush.bf16.msra.mxu0 %v3813_v31  ;;  %v3825_v31 = vld [vmem:[%s5400_s3 + $0x28] sm:$0xff] }
0x1046   : > { %2294 = vmatpush.bf16.msrb.mxu2 %v3826_v23 }
0x1049   : > { %1976 = vmatpush.bf16.msra.mxu0 %v3812_v32  ;;  %v3832_v32 = vld [vmem:[%s5400_s3 + $0x60] sm:$0xff] }
0x104a   : > { %2295 = vmatpush.bf16.msrb.mxu2 %v3825_v31 }
0x104d   : > { %2107 = vmatpush.msrb.mxu0 %v4622_v14 }
0x104f   : > { %2108 = vmatpush.msrb.mxu0 %v4627_v20 }
0x1051   : > { %2109 = vmatpush.msrb.mxu0 %v4638_v30 }
0x1053   : > { %2110 = vmatpush.msrb.mxu0 %v4655_v38 }
0x1055   : > { %2111 = vmatpush.msrb.mxu0 %v4662_v41 }
0x1057   : > { %2112 = vmatpush.msrb.mxu0 %v4669_v43 }
0x1059   : > { %2113 = vmatpush.msrb.mxu0 %v4675_v15 }
0x105b   : > { %2114 = vmatpush.msrb.mxu0 %v4691_v19 }
0x10ae   : > { %v1799_v35 = vpop.f32.mrf.mxu1 }
0x10af   : > { %v1822_v40 = vadd.f32 %v1799_v35, %v4389_v62  ;;  %v3824_v35 = vld [vmem:[%s5400_s3 + $0x20] sm:$0xff] }
0x10b0   : > { %2296 = vmatpush.bf16.msrb.mxu2 %v3824_v35 }
0x10b1   : > { %3964 = vtanh.f32 %v1822_v40  ;;  %v3831_v40 = vld [vmem:[%s5400_s3 + $0x58] sm:$0xff] }
0x10b4   : > { %v1779_v44 = vpop.f32.mrf.mxu2 }
0x10b7   : > { %v3965_v14 = vpop.eup %3964 }
0x10b8   : > { %v1826_v46 = vpack.c.bf16 %v3965_v14, %v3965_v14 }
0x10ba   : > { %1964 = vmatmul.bf16.vlgmr.msrb.gmra.mxu3 %v1826_v46  ;;  %v3830_v46 = vld [vmem:[%s5400_s3 + $0x50] sm:$0xff] }
0x10bc   : > { %v1819_v20 = vpop.f32.mrf.mxu2 }
0x10bd   : > { %v1823_v30 = vadd.f32 %v1819_v20, %v4395_v3  ;;  %v3823_v20 = vld [vmem:[%s5400_s3 + $0x18] sm:$0xff] }
0x10be   : > { %2297 = vmatpush.bf16.msrb.mxu2 %v3823_v20  ;;  %v5065_v20 = vld [vmem:[%s5401_s4 + $0x90] sm:$0xff] }
0x10bf   : > { %3966 = vtanh.f32 %v1823_v30  ;;  %v3829_v30 = vld [vmem:[%s5400_s3 + $0x48] sm:$0xff] }
0x10c5   : > { %v3967_v38 = vpop.eup %3966 }
0x10c6   : > { %v1827_v47 = vpack.c.bf16 %v3967_v38, %v3967_v38  ;;  %v3822_v38 = vld [vmem:[%s5400_s3 + $0x10] sm:$0xff] }
0x10c7   : > { %2298 = vmatpush.bf16.msrb.mxu2 %v3822_v38  ;;  %v5082_v38 = vld [vmem:[%s5401_s4 + $0x98] sm:$0xff] }
0x10c8   : > { %1977 = vmatmul.bf16.vlgmr.msra.gmra.mxu0 %v1827_v47  ;;  %v3828_v47 = vld [vmem:[%s5400_s3 + $0x40] sm:$0xff] }
0x10c9   : > { %2349 = vmatpush.msra.mxu0 %v4851_v8 }
0x113d   : > { %v1965_v41 = vpop.f32.mrf.mxu3 }
0x1145   : > { %v1967_v43 = vpop.f32.mrf.mxu3  ;;  %v1978_v15 = vpop.f32.mrf.mxu0 }
0x1146   : > { %v1979_v19 = vadd.f32 %v1978_v15, %v1965_v41  ;;  %v3821_v41 = vld [vmem:[%s5400_s3 + $0x8] sm:$0xff]  ;;  %v3820_v43 = vld [vmem:[%s5400_s3] sm:$0xff] }
0x1147   : > { %2299 = vmatpush.bf16.msrb.mxu2 %v3821_v41  ;;  %v5093_v41 = vld [vmem:[%s5401_s4 + $0x60] sm:$0xff] }
0x1148   : > { %v1982_v48 = vmul.f32 1.442695, %v1979_v19 }
0x114a   : > { %3968 = vpow2.f32 %v1982_v48 }
0x114b   : > { %2300 = vmatpush.bf16.msrb.mxu2 %v3820_v43  ;;  %v5100_v43 = vld [vmem:[%s5401_s4 + $0x48] sm:$0xff] }
0x114d   : > { %v1980_v49 = vpop.f32.mrf.mxu0 }
0x1150   : > { %v3969_v42 = vpop.eup %3968 }
0x1151   : > { %v1984_v58 = vsel %vm632_vm1, %v3969_v42, 0.0 }
0x1152   : > { %1985 = vadd.xlane.f32.xlu1 %v1984_v58 }
0x11c5   : > { %v1986_v45 = vpop.xlane.xlu1 %1985 }
0x11c6   : > { %3970 = vrcp.f32 %v1986_v45 }
0x11cc   : > { %v3971_v59 = vpop.eup %3970 }
0x11cd   : > { %v1988_v8 = vmul.f32 %v3971_v59, %v3969_v42 }
0x11cf   : > { %v4967_v63 = vmul.f32 %v1990_v60, %v1988_v8 }
0x11d1   : > { %3528 = vmatmul.msk.f32.vlgmr.msra.gmra.mxu1 %vm632_vm1, %v4967_v63 }
0x124e   : > { %v2014_v1 = vpop.f32.mrf.mxu1 }
0x124f   : > { %v2015_v2 = vadd.f32 %v2014_v1, %v1779_v44 }
0x1251   : > { %v2021_v4 = vadd.f32 %v3896_v0, %v2015_v2 }
0x1253   : > { %3972 = vtanh.f32 %v2021_v4  ;;  %v3529_v61 = vmul.f32 -1.442695, %v2021_v4 }
0x1255   : > { %3974 = vpow2.f32 %v3529_v61 }
0x1259   : > { %v3973_v5 = vpop.eup %3972 }
0x125a   : > { %2044 = vrot.lane.b32.xlu2 %v3973_v5, %s4039_s20 }
0x125b   : > { %v3975_v6 = vpop.eup %3974 }
0x125c   : > { %v2025_v7 = vadd.f32 1.0, %v3975_v6 }
0x125e   : > { %3976 = vrcp.f32 %v2025_v7  ;;  %v2037_v50 = vand.u32 2147483648, %v2025_v7  ;;  %vm2031_vm9 = vweird.f32 %v2025_v7  ;;  %v2035_v51 = vand.u32 2147483647, %v2025_v7 }
0x1260   : > { %v2038_v26 = vor.u32 1.1754944e-38, %v2037_v50  ;;  %vm2036_vm11 = vcmp.eq.f32.partialorder %v2035_v51, 8.507059e+37 }
0x1264   : > { %v3977_v10 = vpop.eup %3976 }
0x1265   : > { %v2027_v11 = vmul.f32 %v3977_v10, %v2025_v7  ;;  %vm2032_vm8 = vweird.f32 %v3977_v10 }
0x1266   : > { %vm2033_vm10 = vmor %vm2031_vm9, %vm2032_vm8 }
0x1267   : > { %v2028_v12 = vsub.f32 1.0, %v2027_v11 }
0x1269   : > { %v2029_v13 = vmul.f32 %v3977_v10, %v2028_v12 }
0x126b   : > { %v2030_v16 = vadd.f32 %v3977_v10, %v2029_v13 }
0x126d   : > { %v2034_v53 = vsel %vm2033_vm10, %v3977_v10, %v2030_v16  ;;  %v3897_v16 = vld [vmem:[%s5403_s6] ss:$0 sm:$0xff]  ;;  %vm1049_vm10 = vcmask 130112  }
0x126e   : > { %v2039_v56 = vsel %vm2036_vm11, %v2038_v26, %v2034_v53  ;;  %vm1389_vm11 = vcmask 195712  }
0x126f   : > { %v2042_v28 = vmul.f32 %v2039_v56, %v4902_v39  ;;  %v3834_v39 = vld [vmem:[%s5400_s3 + $0x70] sm:$0xff] }
0x1270   : > { %2307 = vmatpush.bf16.msra.mxu3 %v3834_v39 }
0x1274   : > { %2308 = vmatpush.bf16.msra.mxu3 %v3833_v27 }
0x1278   : > { %2309 = vmatpush.bf16.msra.mxu3 %v3832_v32 }
0x127c   : > { %2310 = vmatpush.bf16.msra.mxu3 %v3831_v40 }
0x1280   : > { %2311 = vmatpush.bf16.msra.mxu3 %v3830_v46  ;;  %v5060_v46 = vld [vmem:[%s5401_s4 + $0xa8] sm:$0xff] }
0x1281   : > { %2447 = vmatpush.msra.mxu1 %v5060_v46 }
0x1283   : > { %2448 = vmatpush.msra.mxu1 %v5065_v20 }
0x1284   : > { %2312 = vmatpush.bf16.msra.mxu3 %v3829_v30  ;;  %v5076_v30 = vld [vmem:[%s5401_s4 + $0x78] sm:$0xff] }
0x1285   : > { %2449 = vmatpush.msra.mxu1 %v5076_v30 }
0x1287   : > { %2450 = vmatpush.msra.mxu1 %v5093_v41 }
0x1288   : > { %2313 = vmatpush.bf16.msra.mxu3 %v3828_v47  ;;  %v5088_v47 = vld [vmem:[%s5401_s4 + $0x80] sm:$0xff] }
0x1289   : > { %2451 = vmatpush.msra.mxu1 %v5100_v43 }
0x12b4   : > { %v2045_v55 = vpop.permute.xlu2 %2044 }
0x12b5   : > { %v2047_v25 = vmul.f32 %v2045_v55, %v2039_v56 }
0x12b7   : > { %2049 = vrot.lane.b32.xlu0 %v2047_v25, %s4040_s21 }
0x1329   : > { %v2050_v33 = vpop.permute.xlu0 %2049 }
0x132a   : > { %v2052_v37 = vadd.f32 %v2050_v33, %v2042_v28 }
0x132c   : > { %3978 = vtanh.f32 %v2052_v37 }
0x1332   : > { %v3979_v21 = vpop.eup %3978 }
0x1333   : > { %2055 = vrot.lane.b32.xlu0 %v3979_v21, %s4039_s20 }
0x13a5   : > { %v2056_v34 = vpop.permute.xlu0 %2055 }
0x13a6   : > { %v2058_v36 = vmul.f32 %v2056_v34, %v2039_v56 }
0x13a8   : > { %2060 = vrot.lane.b32.xlu0 %v2058_v36, %s4040_s21 }
0x13b0   : > { %2326 = vrot.lane.b32.xlu0 %v4845_v24, %s4045_s25  ;;  %s4047_s25 = smov 72  }
0x141a   : > { %v2061_v44 = vpop.permute.xlu0 %2060 }
0x141b   : > { %2063 = vst.msk [vmem:[#allocation2] sm:$0xff] %vm709_vm6, %v2061_v44 }
0x141c   : > { %2064 = vst.msk [vmem:[#allocation2] sm:$0xff] %vm711_vm7, %v2052_v37 }
0x141d   : > { %2070 = vst.msk [vmem:[%s4463_s19 + $0x8] sm:$0xff] %vm709_vm6, %v2061_v44 }
0x1422   : > { %v2327_v10 = vpop.permute.xlu0 %2326 }
0x1423   : > { %v5010_v14 = vld [vmem:[#allocation2] sm:$0xff] }
0x1424   : > { %3530 = vmatmul.msk.f32.vlgmr.msrb.gmra.mxu0 %vm337_vm0, %v5010_v14  ;;  %3531 = vmatmul.msk.f32.vlgmr.msra.gmra.mxu2 %vm337_vm0, %v5010_v14 }
0x1425   : > { %3532 = vmatmul.msk.f32.vlgmr.msrb.gmra.mxu1 %vm337_vm0, %v5010_v14 }
0x14a1   : > { %v2116_v13 = vpop.f32.mrf.mxu0 }
0x14a2   : > { %v2156_v15 = vpop.f32.mrf.mxu1 }
0x14a3   : > { %v2160_v19 = vadd.f32 %v2156_v15, %v4395_v3  ;;  %v5107_v15 = vld [vmem:[%s5401_s4 + $0x30] sm:$0xff] }
0x14a4   : > { %2452 = vmatpush.msra.mxu1 %v5107_v15 }
0x14a5   : > { %3980 = vtanh.f32 %v2160_v19  ;;  %v5113_v19 = vld [vmem:[%s5401_s4 + $0x18] sm:$0xff] }
0x14a6   : > { %2453 = vmatpush.msra.mxu1 %v5113_v19 }
0x14a7   : > { %v2136_v48 = vpop.f32.mrf.mxu2 }
0x14a8   : > { %v2159_v49 = vadd.f32 %v2136_v48, %v4389_v62 }
0x14aa   : > { %3982 = vtanh.f32 %v2159_v49 }
0x14ab   : > { %v3981_v42 = vpop.eup %3980 }
0x14ac   : > { %v2164_v58 = vpack.c.bf16 %v3981_v42, %v3981_v42  ;;  %v2425_v42 = vld [vmem:[%s5401_s4 + $0x68] sm:$0xff] }
0x14ae   : > { %2314 = vmatmul.bf16.vlgmr.msra.gmra.mxu3 %v2164_v58  ;;  %v5127_v58 = vld [vmem:[%s5401_s4] sm:$0xff] }
0x14af   : > { %2454 = vmatpush.msra.mxu1 %v5127_v58 }
0x14b0   : > { %v3983_v45 = vpop.eup %3982 }
0x14b1   : > { %v2163_v59 = vpack.c.bf16 %v3983_v45, %v3983_v45  ;;  %v2422_v45 = vld [vmem:[%s5401_s4 + $0x50] sm:$0xff] }
0x14b3   : > { %2301 = vmatmul.bf16.vlgmr.msrb.gmra.mxu2 %v2163_v59  ;;  %v5136_v59 = vld [vmem:[%s5401_s4 + $0xb8] sm:$0xff] }
0x14b4   : > { %2487 = vmatpush.msrb.mxu1 %v5136_v59 }
0x1531   : > { %v2315_v60 = vpop.f32.mrf.mxu3 }
0x1536   : > { %v2302_v8 = vpop.f32.mrf.mxu2 }
0x1537   : > { %v2316_v0 = vadd.f32 %v2315_v60, %v2302_v8  ;;  %v5141_v60 = vld [vmem:[%s5401_s4 + $0xa0] sm:$0xff]  ;;  %v2419_v8 = vld [vmem:[%s5401_s4 + $0x38] sm:$0xff] }
0x1538   : > { %2488 = vmatpush.msrb.mxu1 %v5141_v60 }
0x1539   : > { %v2319_v1 = vmul.f32 1.442695, %v2316_v0  ;;  %v2317_v2 = vpop.f32.mrf.mxu3  ;;  %v5150_v0 = vld [vmem:[%s5401_s4 + $0x88] sm:$0xff] }
0x153a   : > { %v5159_v2 = vld [vmem:[%s5401_s4 + $0x70] sm:$0xff]  ;;  %2489 = vmatpush.msrb.mxu1 %v5150_v0 }
0x153b   : > { %3984 = vpow2.f32 %v2319_v1  ;;  %v2416_v1 = vld [vmem:[%s5401_s4 + $0x20] sm:$0xff] }
0x153c   : > { %2490 = vmatpush.msrb.mxu1 %v5159_v2 }
0x153e   : > { %v2304_v4 = vpop.f32.mrf.mxu2 }
0x153f   : > { %v2413_v4 = vld [vmem:[%s5401_s4 + $0x8] sm:$0xff] }
0x1541   : > { %v3985_v5 = vpop.eup %3984 }
0x1542   : > { %v2321_v61 = vsel %vm632_vm1, %v3985_v5, 0.0 }
0x1543   : > { %2322 = vadd.xlane.f32.xlu2 %v2321_v61  ;;  %v5174_v61 = vld [vmem:[%s5401_s4 + $0x40] sm:$0xff] }
0x15b6   : > { %v2323_v6 = vpop.xlane.xlu2 %2322 }
0x15b7   : > { %3986 = vrcp.f32 %v2323_v6  ;;  %v5180_v6 = vld [vmem:[%s5401_s4 + $0x28] sm:$0xff] }
0x15bd   : > { %v3987_v7 = vpop.eup %3986 }
0x15be   : > { %v2325_v11 = vmul.f32 %v3987_v7, %v3985_v5  ;;  %v5169_v5 = vld [vmem:[%s5401_s4 + $0x58] sm:$0xff]  ;;  %v5186_v7 = vld [vmem:[%s5401_s4 + $0x10] sm:$0xff] }
0x15bf   : > { %2491 = vmatpush.msrb.mxu1 %v5169_v5 }
0x15c0   : > { %v5043_v12 = vmul.f32 %v2327_v10, %v2325_v11  ;;  %v3843_v10 = vld [vmem:[%s5400_s3 + $0x38] sm:$0xff] }
0x15c1   : > { %2492 = vmatpush.msrb.mxu1 %v5174_v61  ;;  %v3851_v11 = vld [vmem:[%s5400_s3 + $0x78] sm:$0xff]  ;;  %2633 = vmatpush.bf16.msra.mxu2 %v3843_v10 }
0x15c2   : > { %3597 = vmatmul.msk.f32.vlgmr.msra.gmra.mxu0 %vm632_vm1, %v5043_v12  ;;  %2646 = vmatpush.bf16.msrb.mxu3 %v3851_v11 }
0x15c3   : > { %2493 = vmatpush.msrb.mxu1 %v5180_v6 }
0x15c5   : > { %2494 = vmatpush.msrb.mxu1 %v5186_v7 }
0x163f   : > { %v2351_v50 = vpop.f32.mrf.mxu0 }
0x1640   : > { %v2352_v51 = vadd.f32 %v2351_v50, %v2116_v13  ;;  %v3842_v13 = vld [vmem:[%s5400_s3 + $0x30] sm:$0xff]  ;;  %v3841_v50 = vld [vmem:[%s5400_s3 + $0x28] sm:$0xff] }
0x1641   : > { %2634 = vmatpush.bf16.msra.mxu2 %v3842_v13 }
0x1642   : > { %v2358_v53 = vadd.f32 %v3897_v16, %v2352_v51  ;;  %v3850_v16 = vld [vmem:[%s5400_s3 + $0x70] sm:$0xff]  ;;  %v3849_v51 = vld [vmem:[%s5400_s3 + $0x68] sm:$0xff] }
0x1643   : > { %2647 = vmatpush.bf16.msrb.mxu3 %v3850_v16 }
0x1644   : > { %3988 = vtanh.f32 %v2358_v53  ;;  %v3598_v55 = vmul.f32 -1.442695, %v2358_v53  ;;  %v3840_v53 = vld [vmem:[%s5400_s3 + $0x20] sm:$0xff] }
0x1645   : > { %2635 = vmatpush.bf16.msra.mxu2 %v3841_v50 }
0x1646   : > { %3990 = vpow2.f32 %v3598_v55  ;;  %v3839_v55 = vld [vmem:[%s5400_s3 + $0x18] sm:$0xff] }
0x1647   : > { %2648 = vmatpush.bf16.msrb.mxu3 %v3849_v51 }
0x1649   : > { %2636 = vmatpush.bf16.msra.mxu2 %v3840_v53 }
0x164a   : > { %v3989_v26 = vpop.eup %3988 }
0x164b   : > { %2381 = vrot.lane.b32.xlu0 %v3989_v26, %s4039_s20 }
0x164c   : > { %v3991_v56 = vpop.eup %3990 }
0x164d   : > { %v2362_v25 = vadd.f32 1.0, %v3991_v56  ;;  %2637 = vmatpush.bf16.msra.mxu2 %v3839_v55 }
0x164f   : > { %3992 = vrcp.f32 %v2362_v25  ;;  %v2374_v36 = vand.u32 2147483648, %v2362_v25  ;;  %vm2368_vm13 = vweird.f32 %v2362_v25  ;;  %v2372_v18 = vand.u32 2147483647, %v2362_v25 }
0x1651   : > { %v2375_v39 = vor.u32 1.1754944e-38, %v2374_v36  ;;  %vm2373_vm15 = vcmp.eq.f32.partialorder %v2372_v18, 8.507059e+37  ;;  %v3845_v36 = vld [vmem:[%s5400_s3 + $0x48] sm:$0xff]  ;;  %v3844_v18 = vld [vmem:[%s5400_s3 + $0x40] sm:$0xff] }
0x1655   : > { %v3993_v28 = vpop.eup %3992 }
0x1656   : > { %v2364_v33 = vmul.f32 %v3993_v28, %v2362_v25  ;;  %vm2369_vm12 = vweird.f32 %v3993_v28  ;;  %v3838_v25 = vld [vmem:[%s5400_s3 + $0x10] sm:$0xff] }
0x1657   : > { %vm2370_vm14 = vmor %vm2368_vm13, %vm2369_vm12  ;;  %2638 = vmatpush.bf16.msra.mxu2 %v3838_v25  ;;  %vm1730_vm12 = vcmask 261312   ;;  %vm2068_vm13 = vcmask 326912  }
0x1658   : > { %v2365_v37 = vsub.f32 1.0, %v2364_v33  ;;  %v3837_v33 = vld [vmem:[%s5400_s3 + $0x8] sm:$0xff] }
0x165a   : > { %v2366_v21 = vmul.f32 %v3993_v28, %v2365_v37  ;;  %v3847_v37 = vld [vmem:[%s5400_s3 + $0x58] sm:$0xff] }
0x165b   : > { %2639 = vmatpush.bf16.msra.mxu2 %v3837_v33 }
0x165c   : > { %v2367_v34 = vadd.f32 %v3993_v28, %v2366_v21  ;;  %v3836_v21 = vld [vmem:[%s5400_s3] sm:$0xff] }
0x165e   : > { %v2371_v22 = vsel %vm2370_vm14, %v3993_v28, %v2367_v34  ;;  %v3848_v28 = vld [vmem:[%s5400_s3 + $0x60] sm:$0xff]  ;;  %v3846_v34 = vld [vmem:[%s5400_s3 + $0x50] sm:$0xff]  ;;  %vm2405_vm14 = vcmask 392512  }
0x165f   : > { %v2376_v27 = vsel %vm2373_vm15, %v2375_v39, %v2371_v22  ;;  %2649 = vmatpush.bf16.msrb.mxu3 %v3848_v28  ;;  %2640 = vmatpush.bf16.msra.mxu2 %v3836_v21  ;;  %vm2745_vm15 = vcmask 458112  }
0x1660   : > { %v2379_v32 = vmul.f32 %v2376_v27, %v5010_v14  ;;  %v5071_v14 = vld [vmem:[%s5401_s4 + $0xb0] sm:$0xff] }
0x1661   : > { %2467 = vmatpush.msrb.mxu0 %v5071_v14 }
0x1663   : > { %2468 = vmatpush.msrb.mxu0 %v5082_v38  ;;  %2650 = vmatpush.bf16.msrb.mxu3 %v3847_v37 }
0x1665   : > { %2469 = vmatpush.msrb.mxu0 %v5088_v47 }
0x1667   : > { %2470 = vmatpush.msrb.mxu0 %v2425_v42  ;;  %2651 = vmatpush.bf16.msrb.mxu3 %v3846_v34  ;;  %v3859_v34 = vld [vmem:[%s5400_s3 + $0x38] sm:$0xff] }
0x1669   : > { %2471 = vmatpush.msrb.mxu0 %v2422_v45 }
0x166b   : > { %2472 = vmatpush.msrb.mxu0 %v2419_v8  ;;  %2652 = vmatpush.bf16.msrb.mxu3 %v3845_v36  ;;  %v3858_v36 = vld [vmem:[%s5400_s3 + $0x30] sm:$0xff] }
0x166d   : > { %2473 = vmatpush.msrb.mxu0 %v2416_v1 }
0x166f   : > { %2474 = vmatpush.msrb.mxu0 %v2413_v4  ;;  %2653 = vmatpush.bf16.msrb.mxu3 %v3844_v18  ;;  %v3866_v18 = vld [vmem:[%s5400_s3 + $0x70] sm:$0xff] }
0x16bd   : > { %v2382_v23 = vpop.permute.xlu0 %2381 }
0x16be   : > { %v2384_v31 = vmul.f32 %v2382_v23, %v2376_v27 }
0x16c0   : > { %2386 = vrot.lane.b32.xlu1 %v2384_v31, %s4040_s21 }
0x16c8   : > { %2666 = vrot.lane.b32.xlu1 %v4845_v24, %s4046_s14 }
0x1732   : > { %v2387_v35 = vpop.permute.xlu1 %2386 }
0x1733   : > { %v5053_v40 = vadd.f32 %v2387_v35, %v2379_v32 }
0x1735   : > { %3994 = vtanh.f32 %v5053_v40 }
0x173a   : > { %v2667_v11 = vpop.permute.xlu1 %2666 }
0x173b   : > { %v3995_v44 = vpop.eup %3994 }
0x173c   : > { %2392 = vrot.lane.b32.xlu0 %v3995_v44, %s4039_s20 }
0x17ae   : > { %v2393_v48 = vpop.permute.xlu0 %2392 }
0x17af   : > { %v5117_v49 = vmul.f32 %v2393_v48, %v2376_v27 }
0x17b1   : > { %2397 = vrot.lane.b32.xlu0 %v5117_v49, %s4040_s21 }
0x1823   : > { %v2398_v26 = vpop.permute.xlu0 %2397 }
0x1824   : > { %2400 = vst.msk [vmem:[#allocation2] sm:$0xff] %vm709_vm6, %v2398_v26 }
0x1825   : > { %2401 = vst.msk [vmem:[#allocation2] sm:$0xff] %vm711_vm7, %v5053_v40 }
0x182c   : > { %v5217_v56 = vld [vmem:[#allocation2] sm:$0xff] }
0x182d   : > { %3599 = vmatmul.msk.f32.vlgmr.msra.gmra.mxu1 %vm337_vm0, %v5217_v56  ;;  %3600 = vmatmul.msk.f32.vlgmr.msrb.gmra.mxu0 %vm337_vm0, %v5217_v56 }
0x182e   : > { %2807 = vmatpush.msra.mxu1 %v5071_v14 }
0x1830   : > { %2808 = vmatpush.msra.mxu1 %v5082_v38 }
0x1832   : > { %2809 = vmatpush.msra.mxu1 %v5088_v47 }
0x1834   : > { %2810 = vmatpush.msra.mxu1 %v2425_v42 }
0x1835   : > { %3601 = vmatmul.msk.f32.vlgmr.msrb.gmra.mxu1 %vm337_vm0, %v5217_v56 }
0x1836   : > { %2811 = vmatpush.msra.mxu1 %v2422_v45 }
0x1838   : > { %2812 = vmatpush.msra.mxu1 %v2419_v8 }
0x183a   : > { %2813 = vmatpush.msra.mxu1 %v2416_v1 }
0x183c   : > { %2814 = vmatpush.msra.mxu1 %v2413_v4  ;;  %v2670_v4 = vld [vmem:[%s5402_s5] sm:$0xff] }
0x183d   : > { %2689 = vmatpush.msra.mxu0 %v2670_v4  ;;  %3029 = vmatpush.msra.mxu3 %v2670_v4 }
0x183e   : > { %2973 = vmatpush.bf16.msrb.mxu1 %v3859_v34 }
0x183f   : > { %2787 = vmatpush.msrb.mxu0 %v5060_v46 }
0x1841   : > { %2788 = vmatpush.msrb.mxu0 %v5065_v20  ;;  %v3898_v20 = vld [vmem:[%s5403_s6] ss:$0 sm:$0xff] }
0x1842   : > { %2974 = vmatpush.bf16.msrb.mxu1 %v3858_v36 }
0x1843   : > { %2789 = vmatpush.msrb.mxu0 %v5076_v30 }
0x1845   : > { %2790 = vmatpush.msrb.mxu0 %v5093_v41 }
0x1847   : > { %2791 = vmatpush.msrb.mxu0 %v5100_v43 }
0x1849   : > { %2792 = vmatpush.msrb.mxu0 %v5107_v15 }
0x184b   : > { %2793 = vmatpush.msrb.mxu0 %v5113_v19 }
0x184d   : > { %2794 = vmatpush.msrb.mxu0 %v5127_v58 }
0x18aa   : > { %v2456_v22 = vpop.f32.mrf.mxu1  ;;  %v2476_v39 = vpop.f32.mrf.mxu0 }
0x18ab   : > { %v2499_v23 = vadd.f32 %v2476_v39, %v4389_v62  ;;  %v3865_v39 = vld [vmem:[%s5400_s3 + $0x68] sm:$0xff] }
0x18ad   : > { %3996 = vtanh.f32 %v2499_v23  ;;  %v3856_v23 = vld [vmem:[%s5400_s3 + $0x20] sm:$0xff] }
0x18b2   : > { %v2496_v27 = vpop.f32.mrf.mxu1 }
0x18b3   : > { %v3997_v31 = vpop.eup %3996  ;;  %v2500_v32 = vadd.f32 %v2496_v27, %v4395_v3 }
0x18b4   : > { %v2503_v35 = vpack.c.bf16 %v3997_v31, %v3997_v31  ;;  %v3855_v31 = vld [vmem:[%s5400_s3 + $0x18] sm:$0xff] }
0x18b5   : > { %3998 = vtanh.f32 %v2500_v32 }
0x18b6   : > { %2641 = vmatmul.bf16.vlgmr.msra.gmra.mxu2 %v2503_v35  ;;  %v3854_v35 = vld [vmem:[%s5400_s3 + $0x10] sm:$0xff] }
0x18bb   : > { %v3999_v40 = vpop.eup %3998 }
0x18bc   : > { %v2504_v44 = vpack.c.bf16 %v3999_v40, %v3999_v40  ;;  %v3864_v40 = vld [vmem:[%s5400_s3 + $0x60] sm:$0xff] }
0x18be   : > { %2654 = vmatmul.bf16.vlgmr.msrb.gmra.mxu3 %v2504_v44  ;;  %v3853_v44 = vld [vmem:[%s5400_s3 + $0x8] sm:$0xff] }
0x1939   : > { %v2642_v14 = vpop.f32.mrf.mxu2 }
0x1941   : > { %v2644_v38 = vpop.f32.mrf.mxu2  ;;  %v2655_v47 = vpop.f32.mrf.mxu3 }
0x1942   : > { %v2656_v48 = vadd.f32 %v2655_v47, %v2642_v14  ;;  %v3863_v14 = vld [vmem:[%s5400_s3 + $0x58] sm:$0xff]  ;;  %v3852_v38 = vld [vmem:[%s5400_s3] sm:$0xff]  ;;  %v3862_v47 = vld [vmem:[%s5400_s3 + $0x50] sm:$0xff] }
0x1944   : > { %v2659_v42 = vmul.f32 1.442695, %v2656_v48  ;;  %v3861_v48 = vld [vmem:[%s5400_s3 + $0x48] sm:$0xff] }
0x1946   : > { %4000 = vpow2.f32 %v2659_v42  ;;  %v3860_v42 = vld [vmem:[%s5400_s3 + $0x40] sm:$0xff] }
0x1949   : > { %v2657_v45 = vpop.f32.mrf.mxu3 }
0x194c   : > { %v4001_v8 = vpop.eup %4000 }
0x194d   : > { %v2661_v1 = vsel %vm632_vm1, %v4001_v8, 0.0 }
0x194e   : > { %2662 = vadd.xlane.f32.xlu0 %v2661_v1 }
0x19c1   : > { %v2663_v24 = vpop.xlane.xlu0 %2662 }
0x19c2   : > { %4002 = vrcp.f32 %v2663_v24 }
0x19c8   : > { %v4003_v10 = vpop.eup %4002 }
0x19c9   : > { %v2665_v13 = vmul.f32 %v4003_v10, %v4001_v8 }
0x19cb   : > { %v5267_v46 = vmul.f32 %v2667_v11, %v2665_v13 }
0x19cd   : > { %3666 = vmatmul.msk.f32.vlgmr.msra.gmra.mxu0 %vm632_vm1, %v5267_v46 }
0x19ce   : > { %2827 = vmatpush.msra.mxu0 %v5136_v59 }
0x19d0   : > { %2828 = vmatpush.msra.mxu0 %v5141_v60 }
0x19d2   : > { %2829 = vmatpush.msra.mxu0 %v5150_v0 }
0x19d4   : > { %2830 = vmatpush.msra.mxu0 %v5159_v2 }
0x19d6   : > { %2831 = vmatpush.msra.mxu0 %v5169_v5 }
0x19d8   : > { %2832 = vmatpush.msra.mxu0 %v5174_v61 }
0x19da   : > { %2833 = vmatpush.msra.mxu0 %v5180_v6 }
0x19dc   : > { %2834 = vmatpush.msra.mxu0 %v5186_v7 }
0x1a4a   : > { %v2691_v30 = vpop.f32.mrf.mxu0 }
0x1a4b   : > { %v2692_v41 = vadd.f32 %v2691_v30, %v2456_v22  ;;  %v3857_v22 = vld [vmem:[%s5400_s3 + $0x28] sm:$0xff]  ;;  %v4029_v30 = vld [vmem:[%s4190_s26] sm:$0xff]  ;;  %s4048_s26 = smov 56  }
0x1a4c   : > { %2975 = vmatpush.bf16.msrb.mxu1 %v3857_v22 }
0x1a4d   : > { %v2698_v43 = vadd.f32 %v3898_v20, %v2692_v41 }
0x1a4f   : > { %4004 = vtanh.f32 %v2698_v43  ;;  %v3667_v19 = vmul.f32 -1.442695, %v2698_v43 }
0x1a50   : > { %2976 = vmatpush.bf16.msrb.mxu1 %v3856_v23 }
0x1a51   : > { %4006 = vpow2.f32 %v3667_v19 }
0x1a54   : > { %2977 = vmatpush.bf16.msrb.mxu1 %v3855_v31 }
0x1a55   : > { %v4005_v15 = vpop.eup %4004 }
0x1a56   : > { %2721 = vrot.lane.b32.xlu2 %v4005_v15, %s4039_s20 }
0x1a57   : > { %v4007_v58 = vpop.eup %4006 }
0x1a58   : > { %v2702_v59 = vadd.f32 1.0, %v4007_v58  ;;  %2978 = vmatpush.bf16.msrb.mxu1 %v3854_v35 }
0x1a5a   : > { %4008 = vrcp.f32 %v2702_v59  ;;  %v2714_v6 = vand.u32 2147483648, %v2702_v59  ;;  %vm2708_vm3 = vweird.f32 %v2702_v59  ;;  %v2712_v7 = vand.u32 2147483647, %v2702_v59 }
0x1a5c   : > { %v2715_v50 = vor.u32 1.1754944e-38, %v2714_v6  ;;  %vm2713_vm5 = vcmp.eq.f32.partialorder %v2712_v7, 8.507059e+37  ;;  %2979 = vmatpush.bf16.msrb.mxu1 %v3853_v44  ;;  %v3899_v7 = vld [vmem:[%s5403_s6] ss:$0 sm:$0xff] }
0x1a60   : > { %v4009_v60 = vpop.eup %4008  ;;  %2980 = vmatpush.bf16.msrb.mxu1 %v3852_v38 }
0x1a61   : > { %v2704_v0 = vmul.f32 %v4009_v60, %v2702_v59  ;;  %vm2709_vm2 = vweird.f32 %v4009_v60 }
0x1a62   : > { %vm2710_vm4 = vmor %vm2708_vm3, %vm2709_vm2  ;;  %vm3085_vm2 = vcmask 523712   ;;  %vm1394_vm3 = vcmask 785920  }
0x1a63   : > { %v2705_v2 = vsub.f32 1.0, %v2704_v0 }
0x1a65   : > { %v2706_v5 = vmul.f32 %v4009_v60, %v2705_v2 }
0x1a67   : > { %v2707_v61 = vadd.f32 %v4009_v60, %v2706_v5 }
0x1a69   : > { %v2711_v16 = vsel %vm2710_vm4, %v4009_v60, %v2707_v61  ;;  %vm1732_vm4 = vcmask 1048320  }
0x1a6a   : > { %v2716_v53 = vsel %vm2713_vm5, %v2715_v50, %v2711_v16 }
0x1a6b   : > { %v2719_v55 = vmul.f32 %v2716_v53, %v5217_v56  ;;  %v3867_v56 = vld [vmem:[%s5400_s3 + $0x78] sm:$0xff] }
0x1a6c   : > { %2986 = vmatpush.bf16.msrb.mxu2 %v3867_v56 }
0x1a70   : > { %2987 = vmatpush.bf16.msrb.mxu2 %v3866_v18 }
0x1a74   : > { %2988 = vmatpush.bf16.msrb.mxu2 %v3865_v39 }
0x1a78   : > { %2989 = vmatpush.bf16.msrb.mxu2 %v3864_v40 }
0x1a7c   : > { %2990 = vmatpush.bf16.msrb.mxu2 %v3863_v14 }
0x1a80   : > { %2991 = vmatpush.bf16.msrb.mxu2 %v3862_v47 }
0x1a84   : > { %2992 = vmatpush.bf16.msrb.mxu2 %v3861_v48 }
0x1a88   : > { %2993 = vmatpush.bf16.msrb.mxu2 %v3860_v42 }
0x1ab0   : > { %v2722_v51 = vpop.permute.xlu2 %2721 }
0x1ab1   : > { %v2724_v26 = vmul.f32 %v2722_v51, %v2716_v53 }
0x1ab3   : > { %2726 = vrot.lane.b32.xlu1 %v2724_v26, %s4040_s21 }
0x1b25   : > { %v2727_v25 = vpop.permute.xlu1 %2726 }
0x1b26   : > { %v2729_v28 = vadd.f32 %v2727_v25, %v2719_v55 }
0x1b28   : > { %4010 = vtanh.f32 %v2729_v28 }
0x1b2e   : > { %v4011_v33 = vpop.eup %4010 }
0x1b2f   : > { %2732 = vrot.lane.b32.xlu1 %v4011_v33, %s4039_s20 }
0x1ba1   : > { %v2733_v37 = vpop.permute.xlu1 %2732 }
0x1ba2   : > { %v5286_v21 = vmul.f32 %v2733_v37, %v2716_v53 }
0x1ba4   : > { %2737 = vrot.lane.b32.xlu1 %v5286_v21, %s4040_s21 }
0x1bac   : > { %3006 = vrot.lane.b32.xlu1 %v4029_v30, %s4047_s25 }
0x1c16   : > { %v2738_v27 = vpop.permute.xlu1 %2737 }
0x1c17   : > { %2740 = vst.msk [vmem:[#allocation2] sm:$0xff] %vm709_vm6, %v2738_v27 }
0x1c18   : > { %2741 = vst.msk [vmem:[#allocation2] sm:$0xff] %vm711_vm7, %v2729_v28 }
0x1c1e   : > { %v3007_v2 = vpop.permute.xlu1 %3006 }
0x1c1f   : > { %v5316_v32 = vld [vmem:[#allocation2] sm:$0xff] }
0x1c20   : > { %3668 = vmatmul.msk.f32.vlgmr.msrb.gmra.mxu0 %vm337_vm0, %v5316_v32  ;;  %3669 = vmatmul.msk.f32.vlgmr.msra.gmra.mxu1 %vm337_vm0, %v5316_v32 }
0x1c28   : > { %3670 = vmatmul.msk.f32.vlgmr.msra.gmra.mxu0 %vm337_vm0, %v5316_v32 }
0x1c9d   : > { %v2796_v45 = vpop.f32.mrf.mxu0  ;;  %v2816_v8 = vpop.f32.mrf.mxu1 }
0x1c9e   : > { %v2839_v1 = vadd.f32 %v2816_v8, %v4389_v62 }
0x1ca0   : > { %4012 = vtanh.f32 %v2839_v1 }
0x1ca5   : > { %v2836_v4 = vpop.f32.mrf.mxu0 }
0x1ca6   : > { %v4013_v24 = vpop.eup %4012  ;;  %v2840_v10 = vadd.f32 %v2836_v4, %v4395_v3 }
0x1ca7   : > { %v2843_v11 = vpack.c.bf16 %v4013_v24, %v4013_v24 }
0x1ca8   : > { %4014 = vtanh.f32 %v2840_v10 }
0x1ca9   : > { %2981 = vmatmul.bf16.vlgmr.msrb.gmra.mxu1 %v2843_v11 }
0x1cae   : > { %v4015_v13 = vpop.eup %4014 }
0x1caf   : > { %v2844_v20 = vpack.c.bf16 %v4015_v13, %v4015_v13 }
0x1cb1   : > { %2994 = vmatmul.bf16.vlgmr.msrb.gmra.mxu2 %v2844_v20 }
0x1d26   : > { %v2982_v41 = vpop.f32.mrf.mxu1 }
0x1d2e   : > { %v2984_v43 = vpop.f32.mrf.mxu1 }
0x1d34   : > { %v2995_v15 = vpop.f32.mrf.mxu2 }
0x1d35   : > { %v2996_v19 = vadd.f32 %v2995_v15, %v2982_v41 }
0x1d37   : > { %v2999_v62 = vmul.f32 1.442695, %v2996_v19 }
0x1d39   : > { %4016 = vpow2.f32 %v2999_v62 }
0x1d3c   : > { %v2997_v58 = vpop.f32.mrf.mxu2 }
0x1d3f   : > { %v4017_v59 = vpop.eup %4016 }
0x1d40   : > { %v3001_v3 = vsel %vm632_vm1, %v4017_v59, 0.0 }
0x1d41   : > { %3002 = vadd.xlane.f32.xlu2 %v3001_v3 }
0x1d59   : > { %1051 = vrot.lane.b32.xlu2 %v4539_v9, %s4039_s20 }
0x1db4   : > { %v3003_v60 = vpop.xlane.xlu2 %3002 }
0x1db5   : > { %4018 = vrcp.f32 %v3003_v60 }
0x1dbb   : > { %v4019_v0 = vpop.eup %4018 }
0x1dbc   : > { %v1052_v5 = vpop.permute.xlu2 %1051  ;;  %v3005_v61 = vmul.f32 %v4019_v0, %v4017_v59 }
0x1dbd   : > { %1054 = vst.msk [vmem:[%s4463_s19] sm:$0xff] %vm711_vm7, %v1052_v5 }
0x1dbe   : > { %v3009_v6 = vmul.f32 %v3007_v2, %v3005_v61 }
0x1dc0   : > { %3082 = vrot.lane.b32.xlu2 %v3009_v6, %s4048_s26  ;;  %3735 = vmatmul.msk.f32.vlgmr.msra.gmra.mxu3 %vm632_vm1, %v3009_v6 }
0x1e43   : > { %v3031_v16 = vpop.f32.mrf.mxu3 }
0x1e44   : > { %v3032_v50 = vadd.f32 %v3031_v16, %v2796_v45 }
0x1e46   : > { %v3038_v9 = vadd.f32 %v3899_v7, %v3032_v50 }
0x1e48   : > { %4020 = vtanh.f32 %v3038_v9  ;;  %v3736_v53 = vmul.f32 -1.442695, %v3038_v9 }
0x1e4a   : > { %4022 = vpow2.f32 %v3736_v53 }
0x1e4e   : > { %v4021_v51 = vpop.eup %4020 }
0x1e4f   : > { %3061 = vrot.lane.b32.xlu0 %v4021_v51, %s4039_s20 }
0x1e50   : > { %v4023_v26 = vpop.eup %4022 }
0x1e51   : > { %v3042_v55 = vadd.f32 1.0, %v4023_v26 }
0x1e53   : > { %4024 = vrcp.f32 %v3042_v55  ;;  %vm3048_vm1 = vweird.f32 %v3042_v55 }
0x1e57   : > { %1386 = vrot.lane.b32.xlu0 %v4605_v29, %s4049_s9  ;;  %v3054_v29 = vand.u32 2147483648, %v3042_v55 }
0x1e59   : > { %v4025_v25 = vpop.eup %4024  ;;  %v3055_v56 = vor.u32 1.1754944e-38, %v3054_v29 }
0x1e5a   : > { %v3044_v28 = vmul.f32 %v4025_v25, %v3042_v55  ;;  %vm3049_vm0 = vweird.f32 %v4025_v25 }
0x1e5b   : > { %vm3050_vm8 = vmor %vm3048_vm1, %vm3049_vm0 }
0x1e5c   : > { %v3045_v33 = vsub.f32 1.0, %v3044_v28 }
0x1e5e   : > { %v3046_v37 = vmul.f32 %v4025_v25, %v3045_v33 }
0x1e5f   : > { %2065 = vrot.lane.b32.xlu0 %v4967_v63, %s4040_s21  ;;  %v3052_v63 = vand.u32 2147483647, %v3042_v55 }
0x1e60   : > { %v3047_v34 = vadd.f32 %v4025_v25, %v3046_v37 }
0x1e61   : > { %vm3053_vm9 = vcmp.eq.f32.partialorder %v3052_v63, 8.507059e+37 }
0x1e67   : > { %2407 = vrot.lane.b32.xlu0 %v5117_v49, %s4039_s20  ;;  %v3051_v49 = vsel %vm3050_vm8, %v4025_v25, %v3047_v34 }
0x1e68   : > { %v3056_v36 = vsel %vm3053_vm9, %v3055_v56, %v3051_v49 }
0x1e69   : > { %v3059_v27 = vmul.f32 %v3056_v36, %v5316_v32 }
0x1e6f   : > { %2742 = vrot.lane.b32.xlu0 %v5267_v46, %s4050_s10 }
0x1ec1   : > { %v3062_v46 = vpop.permute.xlu0 %3061 }
0x1ec2   : > { %v3064_v18 = vmul.f32 %v3062_v46, %v3056_v36 }
0x1ec4   : > { %3066 = vrot.lane.b32.xlu1 %v3064_v18, %s4040_s21 }
0x1ec9   : > { %v1387_v22 = vpop.permute.xlu0 %1386 }
0x1ed1   : > { %v2066_v39 = vpop.permute.xlu0 %2065 }
0x1ed9   : > { %v2408_v23 = vpop.permute.xlu0 %2407 }
0x1eda   : > { %2410 = vst.msk [vmem:[%s4463_s19 + $0x8] sm:$0xff] %vm711_vm7, %v2408_v23 }
0x1f36   : > { %v3067_v31 = vpop.permute.xlu1 %3066 }
0x1f37   : > { %v3069_v35 = vadd.f32 %v3067_v31, %v3059_v27 }
0x1f39   : > { %4026 = vtanh.f32 %v3069_v35 }
0x1f3f   : > { %v4027_v40 = vpop.eup %4026 }
0x1f40   : > { %3072 = vrot.lane.b32.xlu1 %v4027_v40, %s4039_s20 }
0x1f48   : > { %1046 = vrot.lane.b32.xlu1 %v4520_v54, %s4051_s11 }
0x1f50   : > { %1727 = vrot.lane.b32.xlu1 %v4863_v57, %s4052_s12 }
0x1f58   : > { %2402 = vrot.lane.b32.xlu1 %v5043_v12, %s4053_s13  ;;  %v2743_v12 = vpop.permute.xlu0 %2742 }
0x1f60   : > { %1391 = vrot.lane.b32.xlu1 %v4679_v17, %s4044_s17 }
0x1f68   : > { %2747 = vrot.lane.b32.xlu1 %v5286_v21, %s4044_s17  ;;  %v3083_v21 = vpop.permute.xlu2 %3082 }
0x1fb2   : > { %v3073_v32 = vpop.permute.xlu1 %3072 }
0x1fb3   : > { %v3075_v44 = vmul.f32 %v3073_v32, %v3056_v36 }
0x1fb5   : > { %3077 = vrot.lane.b32.xlu0 %v3075_v44, %s4040_s21 }
0x1fba   : > { %v1047_v54 = vpop.permute.xlu1 %1046 }
0x1fbb   : > { %1050 = vst.msk [vmem:[%s4419_s18] sm:$0xff] %vm1049_vm10, %v1047_v54 }
0x1fbc   : > { %1390 = vst.msk [vmem:[%s4419_s18] sm:$0xff] %vm1389_vm11, %v1387_v22 }
0x1fc2   : > { %v1728_v57 = vpop.permute.xlu1 %1727 }
0x1fc3   : > { %1731 = vst.msk [vmem:[%s4419_s18] sm:$0xff] %vm1730_vm12, %v1728_v57 }
0x1fc4   : > { %2069 = vst.msk [vmem:[%s4419_s18] sm:$0xff] %vm2068_vm13, %v2066_v39 }
0x1fca   : > { %v2403_v17 = vpop.permute.xlu1 %2402 }
0x1fcb   : > { %2406 = vst.msk [vmem:[%s4419_s18] sm:$0xff] %vm2405_vm14, %v2403_v17 }
0x1fcc   : > { %2746 = vst.msk [vmem:[%s4419_s18] sm:$0xff] %vm2745_vm15, %v2743_v12 }
0x1fcd   : > { %3086 = vst.msk [vmem:[%s4419_s18] sm:$0xff] %vm3085_vm2, %v3083_v21 }
0x1fd2   : > { %v1392_v14 = vpop.permute.xlu1 %1391 }
0x1fd3   : > { %1395 = vst.msk [vmem:[%s4463_s19] sm:$0xff] %vm1394_vm3, %v1392_v14 }
0x1fd4   : > { %1733 = vst.msk [vmem:[%s4463_s19] sm:$0xff] %vm1732_vm4, %v4875_v52 }
0x1fda   : > { %v2748_v38 = vpop.permute.xlu1 %2747 }
0x1fdb   : > { %2750 = vst.msk [vmem:[%s4463_s19 + $0x8] sm:$0xff] %vm1394_vm3, %v2748_v38 }
0x1fdc   : > { %3087 = vst.msk [vmem:[%s4463_s19 + $0x8] sm:$0xff] %vm1732_vm4, %v3075_v44 }
0x2027   : > { %v3078_v47 = vpop.permute.xlu0 %3077 }
0x2028   : > { %3080 = vst.msk [vmem:[#allocation2] sm:$0xff] %vm709_vm6, %v3078_v47 }
0x2029   : > { %3081 = vst.msk [vmem:[#allocation2] sm:$0xff] %vm711_vm7, %v3069_v35 }
0x202a PF: > { %s19_s27 = sadd.s32 1, %s4036_s27  }
0x202b   : > { %p16_p4 = scmp.ge.s32.totalorder %s19_s27, 4  }
0x202d   :  { %18 = sbr.rel (!%p16_p4) target bundleno = 1 (0x1), region = 90 }

</bundles_post_ra>
